<compile_context>
chip_gen: v7x
topology: tpu7x:2x2x1
jax: 0.10.0
libtpu: 0.0.40
codegen_flags: <defaults>
</compile_context>

<pallas_src>
import functools

import numpy as np
import jax
import jax.numpy as jnp
from jax import lax
from jax.experimental import pallas as pl
from jax.experimental.pallas import tpu as pltpu


def _bilinear_upsample_matrix(n: int) -> np.ndarray:
    """(2n, n) matrix reproducing torch F.interpolate(scale_factor=2,
    mode='bilinear', align_corners=False) along one axis."""
    U = np.zeros((2 * n, n), dtype=np.float32)
    for k in range(n):
        U[2 * k, max(k - 1, 0)] += 0.25          # even output rows
        U[2 * k, k] += 0.75
        U[2 * k + 1, k] += 0.75                  # odd output rows
        U[2 * k + 1, min(k + 1, n - 1)] += 0.25
    return U


# ----------------------------------------------------------------------------- #
# Kernel                                                                        #
# ----------------------------------------------------------------------------- #
def _attention_kernel(C, BS1, eps, layout, xk_ref, slab_ref, out_ref):
    f32 = jnp.float32

    def seg(name):
        # Static window view into the packed parameter slab (single DMA'd operand).
        r0, c0, h, w = layout[name]
        return slab_ref[r0:r0 + h, c0:c0 + w]

    def mm(a, b):  # plain 2-D MXU matmul
        return jnp.dot(a, b, preferred_element_type=f32)

    def cmix(w, x):
        # Tiny channel mix (M,K)@(K,L), K<=4: VPU broadcast-FMA chain instead of an
        # MXU round-trip on the strictly serial dependency chain (v5e/v6e MRF).
        acc = w[:, 0:1] * x[0:1, :]
        for j in range(1, w.shape[1]):
            acc = acc + w[:, j:j + 1] * x[j:j + 1, :]
        return acc

    def bn_relu(y, gamma, beta):
        # Training-mode BatchNorm2d: biased batch statistics over (batch, spatial)
        # == the lane axis here; affine fused into one scale/shift FMA on the tile.
        m = jnp.mean(y, axis=-1, keepdims=True)
        var = jnp.mean(y * y, axis=-1, keepdims=True) - m * m
        scale = gamma * lax.rsqrt(var + eps)
        shift = beta - m * scale
        return jnp.maximum(y * scale + shift, 0.0)

    xk = xk_ref[...]                                   # (C, B*H*W) — conv input AND residual

    # --- cba: 3x3 / stride-2 / pad-1 conv = one constant spatial-gather matmul
    #     (MXU, padding folded in as zero rows) + 36-term VPU channel mix,
    #     then fused BN + ReLU.
    s = mm(xk, seg('g_all'))                           # (C, 9*B*12)
    w1 = seg('w1')                                     # (C, C*9), [co, ci*9 + k]
    y = None
    for ci in range(C):
        for k in range(9):
            t = (w1[:, ci * 9 + k:ci * 9 + k + 1]
                 * s[ci:ci + 1, k * BS1:(k + 1) * BS1])
            y = t if y is None else y + t
    y = bn_relu(y, seg('bn1_g'), seg('bn1_b'))         # (C, B*12)

    # --- mlp over the flattened spatial dim (batch-block-diagonal weights) -------
    y = jnp.clip(mm(y, seg('mw1')) + seg('mb1'), 0.0, 6.0)   # Linear(12->12) + ReLU6
    y = jnp.clip(mm(y, seg('mw2')) + seg('mb2'), 0.0, 1.0)   # Linear(12->12) + Hardtanh(0,1)

    # --- up0: 1x1 conv commuted in front of bilinear x2 (exact), +bias, BN, ReLU,
    #     residual taken from the same xk operand.
    z = cmix(seg('wc0'), y)                            # (C, B*12)
    y = mm(z, seg('u0')) + seg('bc0')                  # (C, B*48)
    y = bn_relu(y, seg('bn2_g'), seg('bn2_b')) + xk

    # --- up1: 1x1 conv (C->T) commuted in front of bilinear x2, channel softmax ---
    z = cmix(seg('wc1'), y)                            # (T, B*48)
    z = mm(z, seg('u1')) + seg('bc1')                  # (T, B*192)
    z = z - jnp.max(z, axis=0, keepdims=True)          # sublane (channel) max
    e = jnp.exp(z)
    out_ref[...] = e / jnp.sum(e, axis=0, keepdims=True)   # exact softmax


# ----------------------------------------------------------------------------- #
# One-time parameter preprocessing (host numpy) -> single lane-dense VMEM slab  #
# ----------------------------------------------------------------------------- #
def prepare(params, *, channels, temporal, batch, height, width):
    C, T, B, H, W = channels, temporal, batch, height, width
    OH, OW = (H + 1) // 2, (W + 1) // 2
    S1, S2, S3 = OH * OW, H * W, 4 * H * W
    assert S1 == 12, "mlp LazyLinear(12) requires ceil(H/2)*ceil(W/2) == 12"
    assert 2 * OH == H and 2 * OW == W, "residual add requires even H, W"
    BS1 = B * S1
    f = lambda a: np.asarray(a, np.float32)

    # Constant 0/1 spatial-gather matrix for the conv: one B*12-column block per
    # kernel tap k; out-of-bounds taps are simply all-zero (== zero padding).
    g_all = np.zeros((B * S2, 9 * BS1), np.float32)
    for k in range(9):
        kh, kw = divmod(k, 3)
        for b in range(B):
            for oh in range(OH):
                for ow in range(OW):
                    ih, iw = 2 * oh - 1 + kh, 2 * ow - 1 + kw
                    if 0 <= ih < H and 0 <= iw < W:
                        g_all[b * S2 + ih * W + iw,
                              k * BS1 + b * S1 + oh * OW + ow] = 1.0

    eyeB = np.eye(B, dtype=np.float32)
    u0 = np.kron(eyeB, np.kron(_bilinear_upsample_matrix(OH),
                               _bilinear_upsample_matrix(OW)).T)   # (B*12, B*48)
    u1 = np.kron(eyeB, np.kron(_bilinear_upsample_matrix(H),
                               _bilinear_upsample_matrix(W)).T)    # (B*48, B*192)
    # TODO(synk): u1 grows as O(B^2); at large batch drop the block-diag trick,
    # grid over batch (("parallel",) so v7x's 2 TensorCores split it) and re-derive
    # tiling for v7x's 64 MiB VMEM.  At B=2 everything here is a few hundred KB.

    segs = {
        'g_all': g_all,
        'u1': u1,
        'u0': u0,
        'mw1': np.kron(eyeB, f(params['mlp_w1']).T),
        'mw2': np.kron(eyeB, f(params['mlp_w2']).T),
        'w1': f(params['conv1_w']).reshape(C, C * 9),
        'wc0': f(params['up0_w']),
        'wc1': f(params['up1_w']),
        'bn1_g': f(params['bn1_g'])[:, None],
        'bn1_b': f(params['bn1_b'])[:, None],
        'bc0': f(params['up0_b'])[:, None],
        'bn2_g': f(params['bn2_g'])[:, None],
        'bn2_b': f(params['bn2_b'])[:, None],
        'bc1': f(params['up1_b'])[:, None],
        'mb1': np.tile(f(params['mlp_b1']), B)[None, :],
        'mb2': np.tile(f(params['mlp_b2']), B)[None, :],
    }

    # Pack everything into ONE lane-dense slab: wide operators get their own
    # 128-aligned lane ranges, small matrices/vectors are stacked along rows
    # (8-aligned starts) in a final shared 128-lane range.
    layout, col = {}, 0
    for name in ('g_all', 'u1'):
        a = segs[name]
        layout[name] = (0, col, a.shape[0], a.shape[1])
        col += -(-a.shape[1] // 128) * 128
    row = 0
    for name in ('u0', 'mw1', 'mw2', 'w1', 'wc0', 'wc1', 'bn1_g', 'bn1_b',
                 'bc0', 'bn2_g', 'bn2_b', 'bc1', 'mb1', 'mb2'):
        a = segs[name]
        row = -(-row // 8) * 8
        layout[name] = (row, col, a.shape[0], a.shape[1])
        row += a.shape[0]
    n_rows = -(-max(B * S2, row) // 8) * 8
    n_cols = col + 128
    slab = np.zeros((n_rows, n_cols), np.float32)
    for name, a in segs.items():
        r0, c0, h, w = layout[name]
        slab[r0:r0 + h, c0:c0 + w] = a

    # NOTE: nn.LazyBatchNorm2d's first positional arg is `eps`, so the original
    # module (LazyBatchNorm2d(channels)) sets eps = channels for BOTH BN layers.
    meta = dict(C=C, T=T, B=B, H=H, W=W, S1=S1, S2=S2, S3=S3,
                eps=float(C), layout=layout)
    return jnp.asarray(slab), meta


# ----------------------------------------------------------------------------- #
# Per-call forward: one transpose in, pallas_call, one transpose out            #
# ----------------------------------------------------------------------------- #
def attention_forward(x, slab, meta):
    C, T, B, H, W = meta['C'], meta['T'], meta['B'], meta['H'], meta['W']
    S2, S3 = meta['S2'], meta['S3']
    assert x.shape == (B, C, H, W)
    f32 = jnp.float32

    # The only per-call layout glue: channels -> sublanes, batch x spatial -> lanes.
    xk = x.astype(f32).reshape(B, C, S2).transpose(1, 0, 2).reshape(C, B * S2)

    kernel = functools.partial(_attention_kernel, C, B * meta['S1'],
                               meta['eps'], meta['layout'])
    vspec = pl.BlockSpec(memory_space=pltpu.MemorySpace.VMEM)
    out = pl.pallas_call(
        kernel,
        out_shape=jax.ShapeDtypeStruct((T, B * S3), f32),   # lane-dense (384 lanes)
        in_specs=[vspec, vspec],                            # 2 operands, 2 DMAs
        out_specs=vspec,
    )(xk, slab)

    # (T, B*4HW) -> (B, T, 2H, 2W): cheap layout glue outside the kernel.
    return out.reshape(T, B, S3).transpose(1, 0, 2).reshape(B, T, 2 * H, 2 * W)


# ----------------------------------------------------------------------------- #
# Pure-JAX reference (op-for-op translation of the PyTorch module)              #
# ----------------------------------------------------------------------------- #
def _upsample2x_ref(y):
    _, _, h, w = y.shape
    uh = jnp.asarray(_bilinear_upsample_matrix(h))
    uw = jnp.asarray(_bilinear_upsample_matrix(w))
    return jnp.einsum('Hh,bchw,Ww->bcHW', uh, y, uw)


def reference_forward(x, params, *, channels):
    eps = float(channels)    # LazyBatchNorm2d(channels) quirk, training-mode stats
    x = x.astype(jnp.float32)

    def bn(y, g, b):
        m = jnp.mean(y, axis=(0, 2, 3), keepdims=True)
        v = jnp.mean((y - m) ** 2, axis=(0, 2, 3), keepdims=True)
        return ((y - m) * lax.rsqrt(v + eps) * g.reshape(1, -1, 1, 1)
                + b.reshape(1, -1, 1, 1))

    y = lax.conv_general_dilated(x, params['conv1_w'].astype(jnp.float32),
                                 window_strides=(2, 2), padding=((1, 1), (1, 1)),
                                 dimension_numbers=('NCHW', 'OIHW', 'NCHW'),
                                 precision=lax.Precision.HIGHEST)
    y = jnp.maximum(bn(y, params['bn1_g'], params['bn1_b']), 0.0)
    bs, c, h, w = y.shape
    y = y.reshape(bs, c, h * w)
    y = jnp.clip(y @ params['mlp_w1'].T + params['mlp_b1'], 0.0, 6.0)
    y = jnp.clip(y @ params['mlp_w2'].T + params['mlp_b2'], 0.0, 1.0)
    y = y.reshape(bs, c, h, w)
    y = _upsample2x_ref(y)
    y = (jnp.einsum('oc,bchw->bohw', params['up0_w'], y)
         + params['up0_b'].reshape(1, -1, 1, 1))
    y = jnp.maximum(bn(y, params['bn2_g'], params['bn2_b']), 0.0) + x
    y = _upsample2x_ref(y)
    y = (jnp.einsum('oc,bchw->bohw', params['up1_w'], y)
         + params['up1_b'].reshape(1, -1, 1, 1))
    return jax.nn.softmax(y, axis=1)


def init_params(key, channels, temporal):
    C, T = channels, temporal
    ks = jax.random.split(key, 14)
    n = lambda k, shape, s=0.2: jax.random.normal(k, shape, jnp.float32) * s
    return dict(
        conv1_w=n(ks[0], (C, C, 3, 3)),
        bn1_g=1.0 + n(ks[1], (C,), 0.05),
        bn1_b=n(ks[2], (C,), 0.05),
        mlp_w1=n(ks[3], (12, 12)),
        mlp_b1=n(ks[4], (12,), 0.05),
        mlp_w2=n(ks[5], (12, 12)),
        mlp_b2=n(ks[6], (12,), 0.05),
        up0_w=n(ks[7], (C, C)),
        up0_b=n(ks[8], (C,), 0.05),
        bn2_g=1.0 + n(ks[9], (C,), 0.05),
        bn2_b=n(ks[10], (C,), 0.05),
        up1_w=n(ks[11], (T, C)),
        up1_b=n(ks[12], (T,), 0.05),
    )


if __name__ == "__main__":
    channels, temporal = 4, 3
    B, H, W = 2, 8, 6            # ceil(H/2)*ceil(W/2) must equal 12 (LazyLinear(12))
    key = jax.random.PRNGKey(0)
    kx, kp = jax.random.split(key)
    x = jax.random.normal(kx, (B, channels, H, W), jnp.float32)
    params = init_params(kp, channels, temporal)

    # One-time parameter preprocessing (hoisted out of the per-call path).
    slab, meta = prepare(params, channels=channels, temporal=temporal,
                         batch=B, height=H, width=W)
    fwd = jax.jit(lambda xx: attention_forward(xx, slab, meta))

    out = jax.block_until_ready(fwd(x))

    assert out.shape == (B, temporal, 2 * H, 2 * W)
    assert bool(jnp.all(jnp.isfinite(out)))
    # exact softmax over the channel dim: sums to 1 at every (b, h, w)
    assert bool(jnp.allclose(jnp.sum(out, axis=1), 1.0, atol=1e-5))

    # Numerical parity with an op-for-op pure-JAX reference of the PyTorch module.
    with jax.default_matmul_precision("float32"):
        ref = reference_forward(x, params, channels=channels)
    assert bool(jnp.allclose(out, ref, atol=5e-3)), float(jnp.max(jnp.abs(out - ref)))
    print("KERNEL_OK")
</pallas_src>

<mosaic_0001>
module attributes {stable_mosaic.version = 11 : i64} {
  func.func @_attention_kernel(%arg0: memref<4x96xf32, #tpu.memory_space<vmem>>, %arg1: memref<160x768xf32, #tpu.memory_space<vmem>>, %arg2: memref<3x384xf32, #tpu.memory_space<vmem>>) attributes {dimension_semantics = [], scalar_prefetch = 0 : i64, scratch_operands = 0 : i64, tpu.core_type = #tpu.core_type<tc>} {
    %c0 = arith.constant 0 : index
    %c0_0 = arith.constant 0 : index
    %0 = vector.load %arg0[%c0, %c0_0] : memref<4x96xf32, #tpu.memory_space<vmem>>, vector<4x96xf32>
    %c0_1 = arith.constant 0 : index
    %c0_2 = arith.constant 0 : index
    %1 = vector.load %arg1[%c0_1, %c0_2] : memref<160x768xf32, #tpu.memory_space<vmem>>, vector<96x216xf32>
    %cst = arith.constant dense<0.000000e+00> : vector<4x216xf32>
    %2 = tpu.matmul %0, %1, %cst {dimension_numbers = #tpu.dot_dimension_numbers<[1], [0], [0], [1], [0, 0, 1, 1], [], []>} : vector<4x96xf32>, vector<96x216xf32>, vector<4x216xf32> -> vector<4x216xf32>
    %c72 = arith.constant 72 : index
    %c640 = arith.constant 640 : index
    %3 = vector.load %arg1[%c72, %c640] : memref<160x768xf32, #tpu.memory_space<vmem>>, vector<4x36xf32>
    %4 = vector.extract_strided_slice %3 {offsets = [0, 0], sizes = [4, 1], strides = [1, 1]} : vector<4x36xf32> to vector<4x1xf32>
    %5 = vector.extract_strided_slice %2 {offsets = [0, 0], sizes = [1, 24], strides = [1, 1]} : vector<4x216xf32> to vector<1x24xf32>
    %6 = vector.broadcast %4 : vector<4x1xf32> to vector<4x24xf32>
    %7 = vector.broadcast %5 : vector<1x24xf32> to vector<4x24xf32>
    %8 = arith.mulf %6, %7 : vector<4x24xf32>
    %9 = vector.extract_strided_slice %3 {offsets = [0, 1], sizes = [4, 1], strides = [1, 1]} : vector<4x36xf32> to vector<4x1xf32>
    %10 = vector.extract_strided_slice %2 {offsets = [0, 24], sizes = [1, 24], strides = [1, 1]} : vector<4x216xf32> to vector<1x24xf32>
    %11 = vector.broadcast %9 : vector<4x1xf32> to vector<4x24xf32>
    %12 = vector.broadcast %10 : vector<1x24xf32> to vector<4x24xf32>
    %13 = arith.mulf %11, %12 : vector<4x24xf32>
    %14 = arith.addf %8, %13 : vector<4x24xf32>
    %15 = vector.extract_strided_slice %3 {offsets = [0, 2], sizes = [4, 1], strides = [1, 1]} : vector<4x36xf32> to vector<4x1xf32>
    %16 = vector.extract_strided_slice %2 {offsets = [0, 48], sizes = [1, 24], strides = [1, 1]} : vector<4x216xf32> to vector<1x24xf32>
    %17 = vector.broadcast %15 : vector<4x1xf32> to vector<4x24xf32>
    %18 = vector.broadcast %16 : vector<1x24xf32> to vector<4x24xf32>
    %19 = arith.mulf %17, %18 : vector<4x24xf32>
    %20 = arith.addf %14, %19 : vector<4x24xf32>
    %21 = vector.extract_strided_slice %3 {offsets = [0, 3], sizes = [4, 1], strides = [1, 1]} : vector<4x36xf32> to vector<4x1xf32>
    %22 = vector.extract_strided_slice %2 {offsets = [0, 72], sizes = [1, 24], strides = [1, 1]} : vector<4x216xf32> to vector<1x24xf32>
    %23 = vector.broadcast %21 : vector<4x1xf32> to vector<4x24xf32>
    %24 = vector.broadcast %22 : vector<1x24xf32> to vector<4x24xf32>
    %25 = arith.mulf %23, %24 : vector<4x24xf32>
    %26 = arith.addf %20, %25 : vector<4x24xf32>
    %27 = vector.extract_strided_slice %3 {offsets = [0, 4], sizes = [4, 1], strides = [1, 1]} : vector<4x36xf32> to vector<4x1xf32>
    %28 = vector.extract_strided_slice %2 {offsets = [0, 96], sizes = [1, 24], strides = [1, 1]} : vector<4x216xf32> to vector<1x24xf32>
    %29 = vector.broadcast %27 : vector<4x1xf32> to vector<4x24xf32>
    %30 = vector.broadcast %28 : vector<1x24xf32> to vector<4x24xf32>
    %31 = arith.mulf %29, %30 : vector<4x24xf32>
    %32 = arith.addf %26, %31 : vector<4x24xf32>
    %33 = vector.extract_strided_slice %3 {offsets = [0, 5], sizes = [4, 1], strides = [1, 1]} : vector<4x36xf32> to vector<4x1xf32>
    %34 = vector.extract_strided_slice %2 {offsets = [0, 120], sizes = [1, 24], strides = [1, 1]} : vector<4x216xf32> to vector<1x24xf32>
    %35 = vector.broadcast %33 : vector<4x1xf32> to vector<4x24xf32>
    %36 = vector.broadcast %34 : vector<1x24xf32> to vector<4x24xf32>
    %37 = arith.mulf %35, %36 : vector<4x24xf32>
    %38 = arith.addf %32, %37 : vector<4x24xf32>
    %39 = vector.extract_strided_slice %3 {offsets = [0, 6], sizes = [4, 1], strides = [1, 1]} : vector<4x36xf32> to vector<4x1xf32>
    %40 = vector.extract_strided_slice %2 {offsets = [0, 144], sizes = [1, 24], strides = [1, 1]} : vector<4x216xf32> to vector<1x24xf32>
    %41 = vector.broadcast %39 : vector<4x1xf32> to vector<4x24xf32>
    %42 = vector.broadcast %40 : vector<1x24xf32> to vector<4x24xf32>
    %43 = arith.mulf %41, %42 : vector<4x24xf32>
    %44 = arith.addf %38, %43 : vector<4x24xf32>
    %45 = vector.extract_strided_slice %3 {offsets = [0, 7], sizes = [4, 1], strides = [1, 1]} : vector<4x36xf32> to vector<4x1xf32>
    %46 = vector.extract_strided_slice %2 {offsets = [0, 168], sizes = [1, 24], strides = [1, 1]} : vector<4x216xf32> to vector<1x24xf32>
    %47 = vector.broadcast %45 : vector<4x1xf32> to vector<4x24xf32>
    %48 = vector.broadcast %46 : vector<1x24xf32> to vector<4x24xf32>
    %49 = arith.mulf %47, %48 : vector<4x24xf32>
    %50 = arith.addf %44, %49 : vector<4x24xf32>
    %51 = vector.extract_strided_slice %3 {offsets = [0, 8], sizes = [4, 1], strides = [1, 1]} : vector<4x36xf32> to vector<4x1xf32>
    %52 = vector.extract_strided_slice %2 {offsets = [0, 192], sizes = [1, 24], strides = [1, 1]} : vector<4x216xf32> to vector<1x24xf32>
    %53 = vector.broadcast %51 : vector<4x1xf32> to vector<4x24xf32>
    %54 = vector.broadcast %52 : vector<1x24xf32> to vector<4x24xf32>
    %55 = arith.mulf %53, %54 : vector<4x24xf32>
    %56 = arith.addf %50, %55 : vector<4x24xf32>
    %57 = vector.extract_strided_slice %3 {offsets = [0, 9], sizes = [4, 1], strides = [1, 1]} : vector<4x36xf32> to vector<4x1xf32>
    %58 = vector.extract_strided_slice %2 {offsets = [1, 0], sizes = [1, 24], strides = [1, 1]} : vector<4x216xf32> to vector<1x24xf32>
    %59 = vector.broadcast %57 : vector<4x1xf32> to vector<4x24xf32>
    %60 = vector.broadcast %58 : vector<1x24xf32> to vector<4x24xf32>
    %61 = arith.mulf %59, %60 : vector<4x24xf32>
    %62 = arith.addf %56, %61 : vector<4x24xf32>
    %63 = vector.extract_strided_slice %3 {offsets = [0, 10], sizes = [4, 1], strides = [1, 1]} : vector<4x36xf32> to vector<4x1xf32>
    %64 = vector.extract_strided_slice %2 {offsets = [1, 24], sizes = [1, 24], strides = [1, 1]} : vector<4x216xf32> to vector<1x24xf32>
    %65 = vector.broadcast %63 : vector<4x1xf32> to vector<4x24xf32>
    %66 = vector.broadcast %64 : vector<1x24xf32> to vector<4x24xf32>
    %67 = arith.mulf %65, %66 : vector<4x24xf32>
    %68 = arith.addf %62, %67 : vector<4x24xf32>
    %69 = vector.extract_strided_slice %3 {offsets = [0, 11], sizes = [4, 1], strides = [1, 1]} : vector<4x36xf32> to vector<4x1xf32>
    %70 = vector.extract_strided_slice %2 {offsets = [1, 48], sizes = [1, 24], strides = [1, 1]} : vector<4x216xf32> to vector<1x24xf32>
    %71 = vector.broadcast %69 : vector<4x1xf32> to vector<4x24xf32>
    %72 = vector.broadcast %70 : vector<1x24xf32> to vector<4x24xf32>
    %73 = arith.mulf %71, %72 : vector<4x24xf32>
    %74 = arith.addf %68, %73 : vector<4x24xf32>
    %75 = vector.extract_strided_slice %3 {offsets = [0, 12], sizes = [4, 1], strides = [1, 1]} : vector<4x36xf32> to vector<4x1xf32>
    %76 = vector.extract_strided_slice %2 {offsets = [1, 72], sizes = [1, 24], strides = [1, 1]} : vector<4x216xf32> to vector<1x24xf32>
    %77 = vector.broadcast %75 : vector<4x1xf32> to vector<4x24xf32>
    %78 = vector.broadcast %76 : vector<1x24xf32> to vector<4x24xf32>
    %79 = arith.mulf %77, %78 : vector<4x24xf32>
    %80 = arith.addf %74, %79 : vector<4x24xf32>
    %81 = vector.extract_strided_slice %3 {offsets = [0, 13], sizes = [4, 1], strides = [1, 1]} : vector<4x36xf32> to vector<4x1xf32>
    %82 = vector.extract_strided_slice %2 {offsets = [1, 96], sizes = [1, 24], strides = [1, 1]} : vector<4x216xf32> to vector<1x24xf32>
    %83 = vector.broadcast %81 : vector<4x1xf32> to vector<4x24xf32>
    %84 = vector.broadcast %82 : vector<1x24xf32> to vector<4x24xf32>
    %85 = arith.mulf %83, %84 : vector<4x24xf32>
    %86 = arith.addf %80, %85 : vector<4x24xf32>
    %87 = vector.extract_strided_slice %3 {offsets = [0, 14], sizes = [4, 1], strides = [1, 1]} : vector<4x36xf32> to vector<4x1xf32>
    %88 = vector.extract_strided_slice %2 {offsets = [1, 120], sizes = [1, 24], strides = [1, 1]} : vector<4x216xf32> to vector<1x24xf32>
    %89 = vector.broadcast %87 : vector<4x1xf32> to vector<4x24xf32>
    %90 = vector.broadcast %88 : vector<1x24xf32> to vector<4x24xf32>
    %91 = arith.mulf %89, %90 : vector<4x24xf32>
    %92 = arith.addf %86, %91 : vector<4x24xf32>
    %93 = vector.extract_strided_slice %3 {offsets = [0, 15], sizes = [4, 1], strides = [1, 1]} : vector<4x36xf32> to vector<4x1xf32>
    %94 = vector.extract_strided_slice %2 {offsets = [1, 144], sizes = [1, 24], strides = [1, 1]} : vector<4x216xf32> to vector<1x24xf32>
    %95 = vector.broadcast %93 : vector<4x1xf32> to vector<4x24xf32>
    %96 = vector.broadcast %94 : vector<1x24xf32> to vector<4x24xf32>
    %97 = arith.mulf %95, %96 : vector<4x24xf32>
    %98 = arith.addf %92, %97 : vector<4x24xf32>
    %99 = vector.extract_strided_slice %3 {offsets = [0, 16], sizes = [4, 1], strides = [1, 1]} : vector<4x36xf32> to vector<4x1xf32>
    %100 = vector.extract_strided_slice %2 {offsets = [1, 168], sizes = [1, 24], strides = [1, 1]} : vector<4x216xf32> to vector<1x24xf32>
    %101 = vector.broadcast %99 : vector<4x1xf32> to vector<4x24xf32>
    %102 = vector.broadcast %100 : vector<1x24xf32> to vector<4x24xf32>
    %103 = arith.mulf %101, %102 : vector<4x24xf32>
    %104 = arith.addf %98, %103 : vector<4x24xf32>
    %105 = vector.extract_strided_slice %3 {offsets = [0, 17], sizes = [4, 1], strides = [1, 1]} : vector<4x36xf32> to vector<4x1xf32>
    %106 = vector.extract_strided_slice %2 {offsets = [1, 192], sizes = [1, 24], strides = [1, 1]} : vector<4x216xf32> to vector<1x24xf32>
    %107 = vector.broadcast %105 : vector<4x1xf32> to vector<4x24xf32>
    %108 = vector.broadcast %106 : vector<1x24xf32> to vector<4x24xf32>
    %109 = arith.mulf %107, %108 : vector<4x24xf32>
    %110 = arith.addf %104, %109 : vector<4x24xf32>
    %111 = vector.extract_strided_slice %3 {offsets = [0, 18], sizes = [4, 1], strides = [1, 1]} : vector<4x36xf32> to vector<4x1xf32>
    %112 = vector.extract_strided_slice %2 {offsets = [2, 0], sizes = [1, 24], strides = [1, 1]} : vector<4x216xf32> to vector<1x24xf32>
    %113 = vector.broadcast %111 : vector<4x1xf32> to vector<4x24xf32>
    %114 = vector.broadcast %112 : vector<1x24xf32> to vector<4x24xf32>
    %115 = arith.mulf %113, %114 : vector<4x24xf32>
    %116 = arith.addf %110, %115 : vector<4x24xf32>
    %117 = vector.extract_strided_slice %3 {offsets = [0, 19], sizes = [4, 1], strides = [1, 1]} : vector<4x36xf32> to vector<4x1xf32>
    %118 = vector.extract_strided_slice %2 {offsets = [2, 24], sizes = [1, 24], strides = [1, 1]} : vector<4x216xf32> to vector<1x24xf32>
    %119 = vector.broadcast %117 : vector<4x1xf32> to vector<4x24xf32>
    %120 = vector.broadcast %118 : vector<1x24xf32> to vector<4x24xf32>
    %121 = arith.mulf %119, %120 : vector<4x24xf32>
    %122 = arith.addf %116, %121 : vector<4x24xf32>
    %123 = vector.extract_strided_slice %3 {offsets = [0, 20], sizes = [4, 1], strides = [1, 1]} : vector<4x36xf32> to vector<4x1xf32>
    %124 = vector.extract_strided_slice %2 {offsets = [2, 48], sizes = [1, 24], strides = [1, 1]} : vector<4x216xf32> to vector<1x24xf32>
    %125 = vector.broadcast %123 : vector<4x1xf32> to vector<4x24xf32>
    %126 = vector.broadcast %124 : vector<1x24xf32> to vector<4x24xf32>
    %127 = arith.mulf %125, %126 : vector<4x24xf32>
    %128 = arith.addf %122, %127 : vector<4x24xf32>
    %129 = vector.extract_strided_slice %3 {offsets = [0, 21], sizes = [4, 1], strides = [1, 1]} : vector<4x36xf32> to vector<4x1xf32>
    %130 = vector.extract_strided_slice %2 {offsets = [2, 72], sizes = [1, 24], strides = [1, 1]} : vector<4x216xf32> to vector<1x24xf32>
    %131 = vector.broadcast %129 : vector<4x1xf32> to vector<4x24xf32>
    %132 = vector.broadcast %130 : vector<1x24xf32> to vector<4x24xf32>
    %133 = arith.mulf %131, %132 : vector<4x24xf32>
    %134 = arith.addf %128, %133 : vector<4x24xf32>
    %135 = vector.extract_strided_slice %3 {offsets = [0, 22], sizes = [4, 1], strides = [1, 1]} : vector<4x36xf32> to vector<4x1xf32>
    %136 = vector.extract_strided_slice %2 {offsets = [2, 96], sizes = [1, 24], strides = [1, 1]} : vector<4x216xf32> to vector<1x24xf32>
    %137 = vector.broadcast %135 : vector<4x1xf32> to vector<4x24xf32>
    %138 = vector.broadcast %136 : vector<1x24xf32> to vector<4x24xf32>
    %139 = arith.mulf %137, %138 : vector<4x24xf32>
    %140 = arith.addf %134, %139 : vector<4x24xf32>
    %141 = vector.extract_strided_slice %3 {offsets = [0, 23], sizes = [4, 1], strides = [1, 1]} : vector<4x36xf32> to vector<4x1xf32>
    %142 = vector.extract_strided_slice %2 {offsets = [2, 120], sizes = [1, 24], strides = [1, 1]} : vector<4x216xf32> to vector<1x24xf32>
    %143 = vector.broadcast %141 : vector<4x1xf32> to vector<4x24xf32>
    %144 = vector.broadcast %142 : vector<1x24xf32> to vector<4x24xf32>
    %145 = arith.mulf %143, %144 : vector<4x24xf32>
    %146 = arith.addf %140, %145 : vector<4x24xf32>
    %147 = vector.extract_strided_slice %3 {offsets = [0, 24], sizes = [4, 1], strides = [1, 1]} : vector<4x36xf32> to vector<4x1xf32>
    %148 = vector.extract_strided_slice %2 {offsets = [2, 144], sizes = [1, 24], strides = [1, 1]} : vector<4x216xf32> to vector<1x24xf32>
    %149 = vector.broadcast %147 : vector<4x1xf32> to vector<4x24xf32>
    %150 = vector.broadcast %148 : vector<1x24xf32> to vector<4x24xf32>
    %151 = arith.mulf %149, %150 : vector<4x24xf32>
    %152 = arith.addf %146, %151 : vector<4x24xf32>
    %153 = vector.extract_strided_slice %3 {offsets = [0, 25], sizes = [4, 1], strides = [1, 1]} : vector<4x36xf32> to vector<4x1xf32>
    %154 = vector.extract_strided_slice %2 {offsets = [2, 168], sizes = [1, 24], strides = [1, 1]} : vector<4x216xf32> to vector<1x24xf32>
    %155 = vector.broadcast %153 : vector<4x1xf32> to vector<4x24xf32>
    %156 = vector.broadcast %154 : vector<1x24xf32> to vector<4x24xf32>
    %157 = arith.mulf %155, %156 : vector<4x24xf32>
    %158 = arith.addf %152, %157 : vector<4x24xf32>
    %159 = vector.extract_strided_slice %3 {offsets = [0, 26], sizes = [4, 1], strides = [1, 1]} : vector<4x36xf32> to vector<4x1xf32>
    %160 = vector.extract_strided_slice %2 {offsets = [2, 192], sizes = [1, 24], strides = [1, 1]} : vector<4x216xf32> to vector<1x24xf32>
    %161 = vector.broadcast %159 : vector<4x1xf32> to vector<4x24xf32>
    %162 = vector.broadcast %160 : vector<1x24xf32> to vector<4x24xf32>
    %163 = arith.mulf %161, %162 : vector<4x24xf32>
    %164 = arith.addf %158, %163 : vector<4x24xf32>
    %165 = vector.extract_strided_slice %3 {offsets = [0, 27], sizes = [4, 1], strides = [1, 1]} : vector<4x36xf32> to vector<4x1xf32>
    %166 = vector.extract_strided_slice %2 {offsets = [3, 0], sizes = [1, 24], strides = [1, 1]} : vector<4x216xf32> to vector<1x24xf32>
    %167 = vector.broadcast %165 : vector<4x1xf32> to vector<4x24xf32>
    %168 = vector.broadcast %166 : vector<1x24xf32> to vector<4x24xf32>
    %169 = arith.mulf %167, %168 : vector<4x24xf32>
    %170 = arith.addf %164, %169 : vector<4x24xf32>
    %171 = vector.extract_strided_slice %3 {offsets = [0, 28], sizes = [4, 1], strides = [1, 1]} : vector<4x36xf32> to vector<4x1xf32>
    %172 = vector.extract_strided_slice %2 {offsets = [3, 24], sizes = [1, 24], strides = [1, 1]} : vector<4x216xf32> to vector<1x24xf32>
    %173 = vector.broadcast %171 : vector<4x1xf32> to vector<4x24xf32>
    %174 = vector.broadcast %172 : vector<1x24xf32> to vector<4x24xf32>
    %175 = arith.mulf %173, %174 : vector<4x24xf32>
    %176 = arith.addf %170, %175 : vector<4x24xf32>
    %177 = vector.extract_strided_slice %3 {offsets = [0, 29], sizes = [4, 1], strides = [1, 1]} : vector<4x36xf32> to vector<4x1xf32>
    %178 = vector.extract_strided_slice %2 {offsets = [3, 48], sizes = [1, 24], strides = [1, 1]} : vector<4x216xf32> to vector<1x24xf32>
    %179 = vector.broadcast %177 : vector<4x1xf32> to vector<4x24xf32>
    %180 = vector.broadcast %178 : vector<1x24xf32> to vector<4x24xf32>
    %181 = arith.mulf %179, %180 : vector<4x24xf32>
    %182 = arith.addf %176, %181 : vector<4x24xf32>
    %183 = vector.extract_strided_slice %3 {offsets = [0, 30], sizes = [4, 1], strides = [1, 1]} : vector<4x36xf32> to vector<4x1xf32>
    %184 = vector.extract_strided_slice %2 {offsets = [3, 72], sizes = [1, 24], strides = [1, 1]} : vector<4x216xf32> to vector<1x24xf32>
    %185 = vector.broadcast %183 : vector<4x1xf32> to vector<4x24xf32>
    %186 = vector.broadcast %184 : vector<1x24xf32> to vector<4x24xf32>
    %187 = arith.mulf %185, %186 : vector<4x24xf32>
    %188 = arith.addf %182, %187 : vector<4x24xf32>
    %189 = vector.extract_strided_slice %3 {offsets = [0, 31], sizes = [4, 1], strides = [1, 1]} : vector<4x36xf32> to vector<4x1xf32>
    %190 = vector.extract_strided_slice %2 {offsets = [3, 96], sizes = [1, 24], strides = [1, 1]} : vector<4x216xf32> to vector<1x24xf32>
    %191 = vector.broadcast %189 : vector<4x1xf32> to vector<4x24xf32>
    %192 = vector.broadcast %190 : vector<1x24xf32> to vector<4x24xf32>
    %193 = arith.mulf %191, %192 : vector<4x24xf32>
    %194 = arith.addf %188, %193 : vector<4x24xf32>
    %195 = vector.extract_strided_slice %3 {offsets = [0, 32], sizes = [4, 1], strides = [1, 1]} : vector<4x36xf32> to vector<4x1xf32>
    %196 = vector.extract_strided_slice %2 {offsets = [3, 120], sizes = [1, 24], strides = [1, 1]} : vector<4x216xf32> to vector<1x24xf32>
    %197 = vector.broadcast %195 : vector<4x1xf32> to vector<4x24xf32>
    %198 = vector.broadcast %196 : vector<1x24xf32> to vector<4x24xf32>
    %199 = arith.mulf %197, %198 : vector<4x24xf32>
    %200 = arith.addf %194, %199 : vector<4x24xf32>
    %201 = vector.extract_strided_slice %3 {offsets = [0, 33], sizes = [4, 1], strides = [1, 1]} : vector<4x36xf32> to vector<4x1xf32>
    %202 = vector.extract_strided_slice %2 {offsets = [3, 144], sizes = [1, 24], strides = [1, 1]} : vector<4x216xf32> to vector<1x24xf32>
    %203 = vector.broadcast %201 : vector<4x1xf32> to vector<4x24xf32>
    %204 = vector.broadcast %202 : vector<1x24xf32> to vector<4x24xf32>
    %205 = arith.mulf %203, %204 : vector<4x24xf32>
    %206 = arith.addf %200, %205 : vector<4x24xf32>
    %207 = vector.extract_strided_slice %3 {offsets = [0, 34], sizes = [4, 1], strides = [1, 1]} : vector<4x36xf32> to vector<4x1xf32>
    %208 = vector.extract_strided_slice %2 {offsets = [3, 168], sizes = [1, 24], strides = [1, 1]} : vector<4x216xf32> to vector<1x24xf32>
    %209 = vector.broadcast %207 : vector<4x1xf32> to vector<4x24xf32>
    %210 = vector.broadcast %208 : vector<1x24xf32> to vector<4x24xf32>
    %211 = arith.mulf %209, %210 : vector<4x24xf32>
    %212 = arith.addf %206, %211 : vector<4x24xf32>
    %213 = vector.extract_strided_slice %3 {offsets = [0, 35], sizes = [4, 1], strides = [1, 1]} : vector<4x36xf32> to vector<4x1xf32>
    %214 = vector.extract_strided_slice %2 {offsets = [3, 192], sizes = [1, 24], strides = [1, 1]} : vector<4x216xf32> to vector<1x24xf32>
    %215 = vector.broadcast %213 : vector<4x1xf32> to vector<4x24xf32>
    %216 = vector.broadcast %214 : vector<1x24xf32> to vector<4x24xf32>
    %217 = arith.mulf %215, %216 : vector<4x24xf32>
    %218 = arith.addf %212, %217 : vector<4x24xf32>
    %c96 = arith.constant 96 : index
    %c640_3 = arith.constant 640 : index
    %219 = vector.load %arg1[%c96, %c640_3] : memref<160x768xf32, #tpu.memory_space<vmem>>, vector<4x1xf32>
    %c104 = arith.constant 104 : index
    %c640_4 = arith.constant 640 : index
    %220 = vector.load %arg1[%c104, %c640_4] : memref<160x768xf32, #tpu.memory_space<vmem>>, vector<4x1xf32>
    %cst_5 = arith.constant dense<0.000000e+00> : vector<4xf32>
    %221 = vector.multi_reduction <add>, %218, %cst_5 [1] : vector<4x24xf32> to vector<4xf32>
    %222 = vector.shape_cast %221 : vector<4xf32> to vector<4x1xf32>
    %cst_6 = arith.constant 2.400000e+01 : f32
    %223 = vector.broadcast %cst_6 : f32 to vector<4x1xf32>
    %224 = arith.divf %222, %223 : vector<4x1xf32>
    %225 = arith.mulf %218, %218 : vector<4x24xf32>
    %cst_7 = arith.constant dense<0.000000e+00> : vector<4xf32>
    %226 = vector.multi_reduction <add>, %225, %cst_7 [1] : vector<4x24xf32> to vector<4xf32>
    %227 = vector.shape_cast %226 : vector<4xf32> to vector<4x1xf32>
    %cst_8 = arith.constant 2.400000e+01 : f32
    %228 = vector.broadcast %cst_8 : f32 to vector<4x1xf32>
    %229 = arith.divf %227, %228 : vector<4x1xf32>
    %230 = arith.mulf %224, %224 : vector<4x1xf32>
    %231 = arith.subf %229, %230 : vector<4x1xf32>
    %cst_9 = arith.constant 4.000000e+00 : f32
    %232 = vector.broadcast %cst_9 : f32 to vector<4x1xf32>
    %233 = arith.addf %231, %232 : vector<4x1xf32>
    %234 = math.rsqrt %233 : vector<4x1xf32>
    %235 = arith.mulf %219, %234 : vector<4x1xf32>
    %236 = arith.mulf %224, %235 : vector<4x1xf32>
    %237 = arith.subf %220, %236 : vector<4x1xf32>
    %238 = vector.broadcast %235 : vector<4x1xf32> to vector<4x24xf32>
    %239 = arith.mulf %218, %238 : vector<4x24xf32>
    %240 = vector.broadcast %237 : vector<4x1xf32> to vector<4x24xf32>
    %241 = arith.addf %239, %240 : vector<4x24xf32>
    %cst_10 = arith.constant 0.000000e+00 : f32
    %242 = vector.broadcast %cst_10 : f32 to vector<4x24xf32>
    %243 = arith.maximumf %241, %242 : vector<4x24xf32>
    %c24 = arith.constant 24 : index
    %c640_11 = arith.constant 640 : index
    %244 = vector.load %arg1[%c24, %c640_11] : memref<160x768xf32, #tpu.memory_space<vmem>>, vector<24x24xf32>
    %cst_12 = arith.constant dense<0.000000e+00> : vector<4x24xf32>
    %245 = tpu.matmul %243, %244, %cst_12 {dimension_numbers = #tpu.dot_dimension_numbers<[1], [0], [0], [1], [0, 0, 1, 1], [], []>} : vector<4x24xf32>, vector<24x24xf32>, vector<4x24xf32> -> vector<4x24xf32>
    %c144 = arith.constant 144 : index
    %c640_13 = arith.constant 640 : index
    %246 = vector.load %arg1[%c144, %c640_13] : memref<160x768xf32, #tpu.memory_space<vmem>>, vector<1x24xf32>
    %247 = vector.broadcast %246 : vector<1x24xf32> to vector<4x24xf32>
    %248 = arith.addf %245, %247 : vector<4x24xf32>
    %cst_14 = arith.constant 0.000000e+00 : f32
    %cst_15 = arith.constant 6.000000e+00 : f32
    %249 = vector.broadcast %cst_14 : f32 to vector<4x24xf32>
    %250 = arith.maximumf %249, %248 : vector<4x24xf32>
    %251 = vector.broadcast %cst_15 : f32 to vector<4x24xf32>
    %252 = arith.minimumf %251, %250 : vector<4x24xf32>
    %c48 = arith.constant 48 : index
    %c640_16 = arith.constant 640 : index
    %253 = vector.load %arg1[%c48, %c640_16] : memref<160x768xf32, #tpu.memory_space<vmem>>, vector<24x24xf32>
    %cst_17 = arith.constant dense<0.000000e+00> : vector<4x24xf32>
    %254 = tpu.matmul %252, %253, %cst_17 {dimension_numbers = #tpu.dot_dimension_numbers<[1], [0], [0], [1], [0, 0, 1, 1], [], []>} : vector<4x24xf32>, vector<24x24xf32>, vector<4x24xf32> -> vector<4x24xf32>
    %c152 = arith.constant 152 : index
    %c640_18 = arith.constant 640 : index
    %255 = vector.load %arg1[%c152, %c640_18] : memref<160x768xf32, #tpu.memory_space<vmem>>, vector<1x24xf32>
    %256 = vector.broadcast %255 : vector<1x24xf32> to vector<4x24xf32>
    %257 = arith.addf %254, %256 : vector<4x24xf32>
    %cst_19 = arith.constant 0.000000e+00 : f32
    %cst_20 = arith.constant 1.000000e+00 : f32
    %258 = vector.broadcast %cst_19 : f32 to vector<4x24xf32>
    %259 = arith.maximumf %258, %257 : vector<4x24xf32>
    %260 = vector.broadcast %cst_20 : f32 to vector<4x24xf32>
    %261 = arith.minimumf %260, %259 : vector<4x24xf32>
    %c80 = arith.constant 80 : index
    %c640_21 = arith.constant 640 : index
    %262 = vector.load %arg1[%c80, %c640_21] : memref<160x768xf32, #tpu.memory_space<vmem>>, vector<4x4xf32>
    %263 = vector.extract_strided_slice %262 {offsets = [0, 0], sizes = [4, 1], strides = [1, 1]} : vector<4x4xf32> to vector<4x1xf32>
    %264 = vector.extract_strided_slice %261 {offsets = [0, 0], sizes = [1, 24], strides = [1, 1]} : vector<4x24xf32> to vector<1x24xf32>
    %265 = vector.broadcast %263 : vector<4x1xf32> to vector<4x24xf32>
    %266 = vector.broadcast %264 : vector<1x24xf32> to vector<4x24xf32>
    %267 = arith.mulf %265, %266 : vector<4x24xf32>
    %268 = vector.extract_strided_slice %262 {offsets = [0, 1], sizes = [4, 1], strides = [1, 1]} : vector<4x4xf32> to vector<4x1xf32>
    %269 = vector.extract_strided_slice %261 {offsets = [1, 0], sizes = [1, 24], strides = [1, 1]} : vector<4x24xf32> to vector<1x24xf32>
    %270 = vector.broadcast %268 : vector<4x1xf32> to vector<4x24xf32>
    %271 = vector.broadcast %269 : vector<1x24xf32> to vector<4x24xf32>
    %272 = arith.mulf %270, %271 : vector<4x24xf32>
    %273 = arith.addf %267, %272 : vector<4x24xf32>
    %274 = vector.extract_strided_slice %262 {offsets = [0, 2], sizes = [4, 1], strides = [1, 1]} : vector<4x4xf32> to vector<4x1xf32>
    %275 = vector.extract_strided_slice %261 {offsets = [2, 0], sizes = [1, 24], strides = [1, 1]} : vector<4x24xf32> to vector<1x24xf32>
    %276 = vector.broadcast %274 : vector<4x1xf32> to vector<4x24xf32>
    %277 = vector.broadcast %275 : vector<1x24xf32> to vector<4x24xf32>
    %278 = arith.mulf %276, %277 : vector<4x24xf32>
    %279 = arith.addf %273, %278 : vector<4x24xf32>
    %280 = vector.extract_strided_slice %262 {offsets = [0, 3], sizes = [4, 1], strides = [1, 1]} : vector<4x4xf32> to vector<4x1xf32>
    %281 = vector.extract_strided_slice %261 {offsets = [3, 0], sizes = [1, 24], strides = [1, 1]} : vector<4x24xf32> to vector<1x24xf32>
    %282 = vector.broadcast %280 : vector<4x1xf32> to vector<4x24xf32>
    %283 = vector.broadcast %281 : vector<1x24xf32> to vector<4x24xf32>
    %284 = arith.mulf %282, %283 : vector<4x24xf32>
    %285 = arith.addf %279, %284 : vector<4x24xf32>
    %c0_22 = arith.constant 0 : index
    %c640_23 = arith.constant 640 : index
    %286 = vector.load %arg1[%c0_22, %c640_23] : memref<160x768xf32, #tpu.memory_space<vmem>>, vector<24x96xf32>
    %cst_24 = arith.constant dense<0.000000e+00> : vector<4x96xf32>
    %287 = tpu.matmul %285, %286, %cst_24 {dimension_numbers = #tpu.dot_dimension_numbers<[1], [0], [0], [1], [0, 0, 1, 1], [], []>} : vector<4x24xf32>, vector<24x96xf32>, vector<4x96xf32> -> vector<4x96xf32>
    %c112 = arith.constant 112 : index
    %c640_25 = arith.constant 640 : index
    %288 = vector.load %arg1[%c112, %c640_25] : memref<160x768xf32, #tpu.memory_space<vmem>>, vector<4x1xf32>
    %289 = vector.broadcast %288 : vector<4x1xf32> to vector<4x96xf32>
    %290 = arith.addf %287, %289 : vector<4x96xf32>
    %c120 = arith.constant 120 : index
    %c640_26 = arith.constant 640 : index
    %291 = vector.load %arg1[%c120, %c640_26] : memref<160x768xf32, #tpu.memory_space<vmem>>, vector<4x1xf32>
    %c128 = arith.constant 128 : index
    %c640_27 = arith.constant 640 : index
    %292 = vector.load %arg1[%c128, %c640_27] : memref<160x768xf32, #tpu.memory_space<vmem>>, vector<4x1xf32>
    %cst_28 = arith.constant dense<0.000000e+00> : vector<4xf32>
    %293 = vector.multi_reduction <add>, %290, %cst_28 [1] : vector<4x96xf32> to vector<4xf32>
    %294 = vector.shape_cast %293 : vector<4xf32> to vector<4x1xf32>
    %cst_29 = arith.constant 9.600000e+01 : f32
    %295 = vector.broadcast %cst_29 : f32 to vector<4x1xf32>
    %296 = arith.divf %294, %295 : vector<4x1xf32>
    %297 = arith.mulf %290, %290 : vector<4x96xf32>
    %cst_30 = arith.constant dense<0.000000e+00> : vector<4xf32>
    %298 = vector.multi_reduction <add>, %297, %cst_30 [1] : vector<4x96xf32> to vector<4xf32>
    %299 = vector.shape_cast %298 : vector<4xf32> to vector<4x1xf32>
    %cst_31 = arith.constant 9.600000e+01 : f32
    %300 = vector.broadcast %cst_31 : f32 to vector<4x1xf32>
    %301 = arith.divf %299, %300 : vector<4x1xf32>
    %302 = arith.mulf %296, %296 : vector<4x1xf32>
    %303 = arith.subf %301, %302 : vector<4x1xf32>
    %cst_32 = arith.constant 4.000000e+00 : f32
    %304 = vector.broadcast %cst_32 : f32 to vector<4x1xf32>
    %305 = arith.addf %303, %304 : vector<4x1xf32>
    %306 = math.rsqrt %305 : vector<4x1xf32>
    %307 = arith.mulf %291, %306 : vector<4x1xf32>
    %308 = arith.mulf %296, %307 : vector<4x1xf32>
    %309 = arith.subf %292, %308 : vector<4x1xf32>
    %310 = vector.broadcast %307 : vector<4x1xf32> to vector<4x96xf32>
    %311 = arith.mulf %290, %310 : vector<4x96xf32>
    %312 = vector.broadcast %309 : vector<4x1xf32> to vector<4x96xf32>
    %313 = arith.addf %311, %312 : vector<4x96xf32>
    %cst_33 = arith.constant 0.000000e+00 : f32
    %314 = vector.broadcast %cst_33 : f32 to vector<4x96xf32>
    %315 = arith.maximumf %313, %314 : vector<4x96xf32>
    %316 = arith.addf %315, %0 : vector<4x96xf32>
    %c88 = arith.constant 88 : index
    %c640_34 = arith.constant 640 : index
    %317 = vector.load %arg1[%c88, %c640_34] : memref<160x768xf32, #tpu.memory_space<vmem>>, vector<3x4xf32>
    %318 = vector.extract_strided_slice %317 {offsets = [0, 0], sizes = [3, 1], strides = [1, 1]} : vector<3x4xf32> to vector<3x1xf32>
    %319 = vector.extract_strided_slice %316 {offsets = [0, 0], sizes = [1, 96], strides = [1, 1]} : vector<4x96xf32> to vector<1x96xf32>
    %320 = vector.broadcast %318 : vector<3x1xf32> to vector<3x96xf32>
    %321 = vector.broadcast %319 : vector<1x96xf32> to vector<3x96xf32>
    %322 = arith.mulf %320, %321 : vector<3x96xf32>
    %323 = vector.extract_strided_slice %317 {offsets = [0, 1], sizes = [3, 1], strides = [1, 1]} : vector<3x4xf32> to vector<3x1xf32>
    %324 = vector.extract_strided_slice %316 {offsets = [1, 0], sizes = [1, 96], strides = [1, 1]} : vector<4x96xf32> to vector<1x96xf32>
    %325 = vector.broadcast %323 : vector<3x1xf32> to vector<3x96xf32>
    %326 = vector.broadcast %324 : vector<1x96xf32> to vector<3x96xf32>
    %327 = arith.mulf %325, %326 : vector<3x96xf32>
    %328 = arith.addf %322, %327 : vector<3x96xf32>
    %329 = vector.extract_strided_slice %317 {offsets = [0, 2], sizes = [3, 1], strides = [1, 1]} : vector<3x4xf32> to vector<3x1xf32>
    %330 = vector.extract_strided_slice %316 {offsets = [2, 0], sizes = [1, 96], strides = [1, 1]} : vector<4x96xf32> to vector<1x96xf32>
    %331 = vector.broadcast %329 : vector<3x1xf32> to vector<3x96xf32>
    %332 = vector.broadcast %330 : vector<1x96xf32> to vector<3x96xf32>
    %333 = arith.mulf %331, %332 : vector<3x96xf32>
    %334 = arith.addf %328, %333 : vector<3x96xf32>
    %335 = vector.extract_strided_slice %317 {offsets = [0, 3], sizes = [3, 1], strides = [1, 1]} : vector<3x4xf32> to vector<3x1xf32>
    %336 = vector.extract_strided_slice %316 {offsets = [3, 0], sizes = [1, 96], strides = [1, 1]} : vector<4x96xf32> to vector<1x96xf32>
    %337 = vector.broadcast %335 : vector<3x1xf32> to vector<3x96xf32>
    %338 = vector.broadcast %336 : vector<1x96xf32> to vector<3x96xf32>
    %339 = arith.mulf %337, %338 : vector<3x96xf32>
    %340 = arith.addf %334, %339 : vector<3x96xf32>
    %c0_35 = arith.constant 0 : index
    %c256 = arith.constant 256 : index
    %341 = vector.load %arg1[%c0_35, %c256] : memref<160x768xf32, #tpu.memory_space<vmem>>, vector<96x384xf32>
    %cst_36 = arith.constant dense<0.000000e+00> : vector<3x384xf32>
    %342 = tpu.matmul %340, %341, %cst_36 {dimension_numbers = #tpu.dot_dimension_numbers<[1], [0], [0], [1], [0, 0, 1, 1], [], []>} : vector<3x96xf32>, vector<96x384xf32>, vector<3x384xf32> -> vector<3x384xf32>
    %c136 = arith.constant 136 : index
    %c640_37 = arith.constant 640 : index
    %343 = vector.load %arg1[%c136, %c640_37] : memref<160x768xf32, #tpu.memory_space<vmem>>, vector<3x1xf32>
    %344 = vector.broadcast %343 : vector<3x1xf32> to vector<3x384xf32>
    %345 = arith.addf %342, %344 : vector<3x384xf32>
    %cst_38 = arith.constant dense<0xFF800000> : vector<384xf32>
    %346 = vector.multi_reduction <maximumf>, %345, %cst_38 [0] : vector<3x384xf32> to vector<384xf32>
    %347 = vector.shape_cast %346 : vector<384xf32> to vector<1x384xf32>
    %348 = vector.broadcast %347 : vector<1x384xf32> to vector<3x384xf32>
    %349 = arith.subf %345, %348 : vector<3x384xf32>
    %350 = math.exp %349 : vector<3x384xf32>
    %cst_39 = arith.constant dense<0.000000e+00> : vector<384xf32>
    %351 = vector.multi_reduction <add>, %350, %cst_39 [0] : vector<3x384xf32> to vector<384xf32>
    %352 = vector.shape_cast %351 : vector<384xf32> to vector<1x384xf32>
    %353 = vector.broadcast %352 : vector<1x384xf32> to vector<3x384xf32>
    %354 = arith.divf %350, %353 : vector<3x384xf32>
    %c0_40 = arith.constant 0 : index
    %c0_41 = arith.constant 0 : index
    %355 = vector.load %arg2[%c0_40, %c0_41] : memref<3x384xf32, #tpu.memory_space<vmem>>, vector<3x384xf32>
    tpu.vector_store %arg2[%c0_40, %c0_41], %354 {strides = array<i32>} : memref<3x384xf32, #tpu.memory_space<vmem>>, vector<3x384xf32>,
    return
  }
}

</mosaic_0001>

<bundles_post_ra>
// kernel: _lambda_.1
= control target key start
LH: loop header
LB: loop body
LE: loop exit
PB: predicated region body
PF: predicated region fallthrough
CT: control target
= control target key end

     0   :  { %7 = vsyncpa [#allocation3], 0  ;;  %s1464_s9 = smov [#allocation2]   ;;  %s1768_s0 = inlined_call_operand.vmem [shape: f32[4,96], index: 0, kind: input, shape index: {}]   ;;  %s1769_s1 = inlined_call_operand.hbm [shape: f32[160,768], index: 1, kind: input, shape index: {}]   ;;  %s1770_s2 = inlined_call_operand.vmem [shape: f32[3,384], index: 2, kind: output, shape index: {}]  }
   0x1   :  { %s15_s10 = sshll.u32 %s1464_s9, 4  ;;  %s1440_s13 = scalar_lea.hbm %s1769_s1, 15360  ;;  %s16_s10 = int_to_ptr.vmem [resolvable:$true] %s15_s10 }
   0x2   :  { %p1441_p0 = scmp.ne.s32.totalorder %s1769_s1, %s1440_s13  ;;  %p1444_p1 = scmp.lt.u32.totalorder %s1440_s13, %s1769_s1 }
   0x4   :  { %p1446_p2 = pnand %p1444_p1, %p1441_p0 }
   0x6   :  { %1449 = shalt.err (!%p1446_p2)
}
   0x7   :  { %s1450_s18 = scalar_lea.vmem %s16_s10, 15360  ;;  %p1455_p4 = scmp.lt.s32.totalorder %s16_s10, %s16_s10 }
   0x8   :  { %p1451_p3 = scmp.ne.s32.totalorder %s16_s10, %s1450_s18  ;;  %p1456_p5 = scmp.lt.s32.totalorder %s1450_s18, %s1450_s18 }
   0xa   :  { %p1457_p6 = por %p1456_p5, %p1455_p4 }
   0xc   :  { %p1458_p7 = pnand %p1457_p6, %p1451_p3 }
   0xe   :  { %1461 = shalt.err (!%p1458_p7)
}
   0xf   :  { %s1465_s19 = smov 768   ;;  %s1466_s20 = smov 48  }
  0x10   :  { %21 = dma.hbm_to_vmem [thread:$0]  %s1769_s1, 15360, %s16_s10, [#allocation3], %s1465_s19, %s1465_s19, %s1466_s20  }
  0x11   :  { %1462 = dma.done.wait [#allocation3], 15360  }
  0x12   :  { %1463 = vsyncadd [#allocation3], 4294951936  ;;  %v1467_v0 = vmov 3   ;;  %v1468_v1 = vmov 0.0   ;;  %v1469_v2 = vmov 1   ;;  %v27_v4 = vld [vmem:[#allocation2 + $0x8] sm:$0xff] }
  0x13   :  { %1380 = vset.pattern.permute.xlu1 %v1467_v0  ;;  %118 = vmatprep.mubr.f32.mxu0 %v1468_v1  ;;  %v1544_v3 = vld [vmem:[#allocation2 + $0x1d8] sm:$0xf]  ;;  %v26_v7 = vld [vmem:[#allocation2] sm:$0xff]  ;;  %v28_v8 = vld [vmem:[#allocation2 + $0x30] sm:$0xff]  ;;  %v1470_v18 = vmov 4   ;;  %v1471_v24 = vmov 2  }
  0x14   :  { %1378 = vset.pattern.permute.xlu0 %v1469_v2  ;;  %v29_v5 = vld [vmem:[#allocation2 + $0x38] sm:$0xff]  ;;  %157 = vperm.xlu1 %1380, %v1544_v3   ;;  %v31_v9 = vld [vmem:[#allocation2 + $0x68] sm:$0xff]  ;;  %v1255_v10 = vpack.c.bf16 %v28_v8, %v26_v7  ;;  %v30_v12 = vld [vmem:[#allocation2 + $0x60] sm:$0xff]  ;;  %v1472_v29 = vmov 5   ;;  %v1473_v32 = vmov 6   ;;  %v1474_v39 = vmov 7  }
  0x15   :  { %v1253_v6 = vpack.c.bf16 %v29_v5, %v27_v4  ;;  %137 = vperm.xlu0 %1378, %v1544_v3   ;;  %v33_v11 = vld [vmem:[#allocation2 + $0x98] sm:$0xff]  ;;  %v32_v13 = vld [vmem:[#allocation2 + $0x90] sm:$0xff]  ;;  %v35_v15 = vld [vmem:[#allocation2 + $0xc8] sm:$0xff]  ;;  %v1475_v44 = vmov 10   ;;  %v1476_v45 = vmov 8   ;;  %v1477_v47 = vmov 13  }
  0x16   :  { %v1257_v14 = vpack.c.bf16 %v33_v11, %v31_v9  ;;  %v37_v16 = vld [vmem:[#allocation2 + $0xf8] sm:$0xff]  ;;  %v1259_v17 = vpack.c.bf16 %v32_v13, %v30_v12  ;;  %v34_v20 = vld [vmem:[#allocation2 + $0xc0] sm:$0xff]  ;;  %v36_v21 = vld [vmem:[#allocation2 + $0xf0] sm:$0xff]  ;;  %vm50_vm0 = vcmask 785408   ;;  %v1478_v49 = vmov 11   ;;  %s1503_s24 = smov 56  }
  0x17   :  { %1254 = vmatprep.subr.bf16.mxu0 %v1253_v6  ;;  %v1261_v19 = vpack.c.bf16 %v37_v16, %v35_v15  ;;  %v39_v22 = vld [vmem:[#allocation2 + $0x128] sm:$0xff]  ;;  %v41_v23 = vld [vmem:[#allocation2 + $0x158] sm:$0xff]  ;;  %v1263_v25 = vpack.c.bf16 %v36_v21, %v34_v20  ;;  %v38_v27 = vld [vmem:[#allocation2 + $0x120] sm:$0xff]  ;;  %v1479_v50 = vmov 16   ;;  %v1480_v51 = vmov 12   ;;  %s1504_s25 = smov 104  }
  0x18   :  { %1256 = vmatpush1.bf16.msra.mxu0 %v1255_v10  ;;  %1381 = vset.pattern.permute.xlu1 %v1470_v18  ;;  %v1265_v26 = vpack.c.bf16 %v41_v23, %v39_v22  ;;  %v40_v28 = vld [vmem:[#allocation2 + $0x150] sm:$0xff]  ;;  %v43_v30 = vld [vmem:[#allocation2 + $0x188] sm:$0xff]  ;;  %v45_v31 = vld [vmem:[#allocation2 + $0x1b8] sm:$0xff]  ;;  %v1481_v52 = vmov 20   ;;  %v1482_v53 = vmov 14   ;;  %v1483_v54 = vmov 23  }
  0x19   :  { %1258 = vmatprep.subr.bf16.mxu0 %v1257_v14  ;;  %167 = vperm.xlu1 %1381, %v1544_v3   ;;  %v1267_v33 = vpack.c.bf16 %v40_v28, %v38_v27  ;;  %v1269_v34 = vpack.c.bf16 %v45_v31, %v43_v30  ;;  %v42_v35 = vld [vmem:[#allocation2 + $0x180] sm:$0xff]  ;;  %v44_v36 = vld [vmem:[#allocation2 + $0x1b0] sm:$0xff]  ;;  %v47_v37 = vld [vmem:[#allocation2 + $0x1e8] sm:$0xff]  ;;  %v1484_v55 = vmov 15   ;;  %v1485_v56 = vmov 26   ;;  %s1505_s26 = smov 8  }
  0x1a   :  { %1379 = vset.pattern.permute.xlu0 %v1471_v24  ;;  %v49_v38 = vld [vmem:[#allocation2 + $0x218] sm:$0xff]  ;;  %v1271_v40 = vpack.c.bf16 %v44_v36, %v42_v35  ;;  %v46_v42 = vld [vmem:[#allocation2 + $0x1e0] sm:$0xff]  ;;  %v48_v43 = vld [vmem:[#allocation2 + $0x210] sm:$0xff]  ;;  %v1486_v57 = vmov 17   ;;  %v1487_v58 = vmov 32   ;;  %v1488_v59 = vmov 19  }
  0x1b   :  { %147 = vperm.xlu0 %1379, %v1544_v3   ;;  %v1273_v41 = vpack.c.bf16 %v49_v38, %v47_v37  ;;  %v1275_v46 = vpack.c.bf16 %v48_v43, %v46_v42  ;;  %v25_v48 = vld [vmem:[%s1768_s0] sm:$0xf]  ;;  %v1489_v60 = vmov 0   ;;  %v1490_v61 = vmov 21   ;;  %s1506_s27 = smov 80   ;;  %s1507_s28 = smov 32  }
  0x1c   :  { %1260 = vmatpush1.bf16.msra.mxu0 %v1259_v17  ;;  %v1491_v62 = vmov 22   ;;  %v1492_v63 = vmov 24   ;;  %v1493_v4 = vmov 25   ;;  %v1494_v5 = vmov 28   ;;  %s1508_s29 = smov 88   ;;  %s1509_s30 = smov 112  }
  0x1d   :  { %1262 = vmatprep.subr.bf16.mxu0 %v1261_v19  ;;  %1382 = vset.pattern.permute.xlu1 %v1472_v29  ;;  %v1495_v6 = vmov 29   ;;  %v1496_v7 = vmov 30   ;;  %v1497_v8 = vmov 31   ;;  %v1498_v9 = vmov 33   ;;  %s1510_s3 = smov 64  }
  0x1e   :  { %177 = vperm.xlu1 %1382, %v1544_v3   ;;  %v1499_v10 = vmov 34   ;;  %v1500_v11 = vmov 35   ;;  %v1501_v12 = vmov 9   ;;  %v1502_v13 = vmov 18  }
  0x1f   :  { %1383 = vset.pattern.permute.xlu0 %v1473_v32  ;;  %v131_v22 = vlaneseq  ;;  %vm192_vm1 = vcmask 64512   ;;  %vm525_vm2 = vcmask 191488   ;;  %vm1513_vm3 = vmmov 0  }
  0x20   :  { %1264 = vmatpush1.bf16.msra.mxu0 %v1263_v25  ;;  %197 = vperm.xlu0 %1383, %v1544_v3   ;;  %vm560_vm4 = vcmask 195584   ;;  %vm840_vm5 = vcmask 781312   ;;  %vm1099_vm6 = vcmask 1042432  }
  0x21   :  { %1266 = vmatprep.subr.bf16.mxu0 %v1265_v26  ;;  %v1590_v26 = vshrl.u32 %v131_v22, 7  ;;  %1205 = vmatprep.mubr.msk.f32.mxu1 %vm1513_vm3, %v1468_v1 }
  0x22   :  { %1384 = vset.pattern.permute.xlu1 %v1474_v39 }
  0x23   :  { %207 = vperm.xlu1 %1384, %v1544_v3   ;;  %v1593_v27 = vsub.s32 0, %v1590_v26 }
  0x24   :  { %1268 = vmatpush1.bf16.msra.mxu0 %v1267_v33  ;;  %1386 = vset.pattern.permute.xlu0 %v1475_v44  ;;  %v1606_v33 = vsub.s32 1, %v1590_v26 }
  0x25   :  { %1270 = vmatprep.subr.bf16.mxu0 %v1269_v34  ;;  %237 = vperm.xlu0 %1386, %v1544_v3  }
  0x27   :  { %1385 = vset.pattern.permute.xlu1 %v1476_v45 }
  0x28   :  { %1272 = vmatpush1.bf16.msra.mxu0 %v1271_v40  ;;  %217 = vperm.xlu1 %1385, %v1544_v3  }
  0x29   :  { %1274 = vmatprep.subr.bf16.mxu0 %v1273_v41  ;;  %1389 = vset.pattern.permute.xlu0 %v1477_v47 }
  0x2a   :  { %267 = vperm.xlu0 %1389, %v1544_v3  }
  0x2c   :  { %1276 = vmatpush1.bf16.msra.mxu0 %v1275_v46  ;;  %1387 = vset.pattern.permute.xlu1 %v1478_v49 }
  0x2d   :  { %247 = vperm.xlu1 %1387, %v1544_v3  }
  0x2e   :  { %1392 = vset.pattern.permute.xlu0 %v1479_v50 }
  0x2f   :  { %1168 = vmatmul.mubr.msk.f32.vlgmr.msra.gmra.mrb[0].mxu0 %vm50_vm0, %v25_v48  ;;  %306 = vperm.xlu0 %1392, %v1544_v3  }
  0x30   :  { %1250 = vmatprep.mubr.msk.f32.mxu0 %vm1513_vm3, %v1468_v1 }
  0x31   :  { %1388 = vset.pattern.permute.xlu1 %v1480_v51 }
  0x32   :  { %257 = vperm.xlu1 %1388, %v1544_v3  }
  0x33   :  { %1395 = vset.pattern.permute.xlu0 %v1481_v52 }
  0x34   :  { %346 = vperm.xlu0 %1395, %v1544_v3  }
  0x36   :  { %1390 = vset.pattern.permute.xlu1 %v1482_v53 }
  0x37   :  { %277 = vperm.xlu1 %1390, %v1544_v3  }
  0x38   :  { %1398 = vset.pattern.permute.xlu0 %v1483_v54 }
  0x39   :  { %376 = vperm.xlu0 %1398, %v1544_v3  }
  0x3b   :  { %1391 = vset.pattern.permute.xlu1 %v1484_v55  ;;  %v1637_v55 = vsub.s32 2, %v1590_v26 }
  0x3c   :  { %296 = vperm.xlu1 %1391, %v1544_v3  }
  0x3d   :  { %1401 = vset.pattern.permute.xlu0 %v1485_v56 }
  0x3e   :  { %415 = vperm.xlu0 %1401, %v1544_v3  }
  0x40   :  { %1393 = vset.pattern.permute.xlu1 %v1486_v57 }
  0x41   :  { %316 = vperm.xlu1 %1393, %v1544_v3  }
  0x42   :  { %1406 = vset.pattern.permute.xlu0 %v1487_v58 }
  0x43   :  { %475 = vperm.xlu0 %1406, %v1544_v3  }
  0x45   :  { %1394 = vset.pattern.permute.xlu1 %v1488_v59 }
  0x46   :  { %336 = vperm.xlu1 %1394, %v1544_v3  }
  0x47   :  { %1407 = vset.pattern.permute.xlu0 %v1489_v60 }
  0x48   :  { %128 = vperm.xlu0 %1407, %v1544_v3  }
  0x4a   :  { %1396 = vset.pattern.permute.xlu1 %v1490_v61 }
  0x4b   :  { %356 = vperm.xlu1 %1396, %v1544_v3  }
  0x4f   :  { %1397 = vset.pattern.permute.xlu1 %v1491_v62 }
  0x50   :  { %366 = vperm.xlu1 %1397, %v1544_v3  }
  0x54   :  { %1399 = vset.pattern.permute.xlu1 %v1492_v63 }
  0x55   :  { %395 = vperm.xlu1 %1399, %v1544_v3  }
  0x59   :  { %1400 = vset.pattern.permute.xlu1 %v1493_v4 }
  0x5a   :  { %405 = vperm.xlu1 %1400, %v1544_v3  }
  0x5e   :  { %1402 = vset.pattern.permute.xlu1 %v1494_v5  ;;  %v1511_v5 = vmov 27  }
  0x5f   :  { %435 = vperm.xlu1 %1402, %v1544_v3  }
  0x63   :  { %1403 = vset.pattern.permute.xlu1 %v1495_v6 }
  0x64   :  { %445 = vperm.xlu1 %1403, %v1544_v3  }
  0x68   :  { %1404 = vset.pattern.permute.xlu1 %v1496_v7 }
  0x69   :  { %455 = vperm.xlu1 %1404, %v1544_v3  }
  0x6d   :  { %1405 = vset.pattern.permute.xlu1 %v1497_v8 }
  0x6e   :  { %465 = vperm.xlu1 %1405, %v1544_v3  }
  0x72   :  { %1408 = vset.pattern.permute.xlu1 %v1498_v9 }
  0x73   :  { %494 = vperm.xlu1 %1408, %v1544_v3  }
  0x77   :  { %1409 = vset.pattern.permute.xlu1 %v1499_v10 }
  0x78   :  { %504 = vperm.xlu1 %1409, %v1544_v3  }
  0x7c   :  { %1410 = vset.pattern.permute.xlu1 %v1500_v11 }
  0x7d   :  { %514 = vperm.xlu1 %1410, %v1544_v3  }
  0x81   :  { %1411 = vset.pattern.permute.xlu1 %v1501_v12 }
  0x82   :  { %227 = vperm.xlu1 %1411, %v1544_v3  }
  0x86   :  { %1412 = vset.pattern.permute.xlu1 %v1502_v13 }
  0x93   :  { %v158_v14 = vpop.permute.xlu1 %157 }
  0x94   :  { %v138_v25 = vpop.permute.xlu0 %137 }
  0x98   :  { %v168_v15 = vpop.permute.xlu1 %167 }
  0x9a   :  { %v148_v29 = vpop.permute.xlu0 %147 }
  0x9d   :  { %v178_v16 = vpop.permute.xlu1 %177 }
  0x9f   :  { %v198_v37 = vpop.permute.xlu0 %197 }
  0xa2   :  { %v208_v17 = vpop.permute.xlu1 %207 }
  0xa4   :  { %v238_v42 = vpop.permute.xlu0 %237 }
  0xa7   :  { %v218_v18 = vpop.permute.xlu1 %217 }
  0xa9   :  { %v268_v54 = vpop.permute.xlu0 %267 }
  0xac   :  { %v248_v19 = vpop.permute.xlu1 %247 }
  0xae   :  { %v307_v59 = vpop.permute.xlu0 %306 }
  0xb1   :  { %v258_v20 = vpop.permute.xlu1 %257 }
  0xb3   :  { %v347_v8 = vpop.permute.xlu0 %346 }
  0xb6   :  { %v1586_v21 = vpop.permute.xlu1 %277 }
  0xb8   :  { %v377_v12 = vpop.permute.xlu0 %376 }
  0xbb   :  { %v1588_v23 = vpop.permute.xlu1 %296 }
  0xc0   :  { %v1595_v28 = vpop.permute.xlu1 %316 }
  0xc5   :  { %v337_v36 = vpop.permute.xlu1 %336 }
  0xca   :  { %v357_v41 = vpop.permute.xlu1 %356 }
  0xcf   :  { %v367_v48 = vpop.permute.xlu1 %366 }
  0xd4   :  { %v396_v51 = vpop.permute.xlu1 %395 }
  0xd9   :  { %v406_v58 = vpop.permute.xlu1 %405 }
  0xde   :  { %v436_v4 = vpop.permute.xlu1 %435 }
  0xe3   :  { %v446_v11 = vpop.permute.xlu1 %445 }
 0x102   :  { %v1597_v30 = vpop.f32.mrb[0].mxu0 }
 0x103   :  { %v1601_v31 = vrot.slane %v1597_v30, %v1593_v27  ;;  %v1603_v32 = vpop.f32.mrb[1].mxu0  ;;  %v1614_v38 = vrot.slane %v1597_v30, %v1606_v33  ;;  %v1645_v61 = vrot.slane %v1597_v30, %v1637_v55 }
 0x104   :  { %v183_v43 = vrot.slane %v1603_v32, %v1593_v27  ;;  %v283_v56 = vrot.slane %v1603_v32, %v1606_v33 }
 0x105   :  { %v160_v34 = vmul.f32 %v158_v14, %v1601_v31  ;;  %v140_v35 = vmul.f32 %v138_v25, %v1601_v31  ;;  %v184_v39 = vmul.f32 %v178_v16, %v1601_v31  ;;  %v150_v40 = vmul.f32 %v148_v29, %v1601_v31 }
 0x106   :  { %v240_v44 = vmul.f32 %v238_v42, %v1614_v38  ;;  %v170_v45 = vmul.f32 %v168_v15, %v1601_v31  ;;  %v250_v46 = vmul.f32 %v248_v19, %v1614_v38  ;;  %v210_v47 = vmul.f32 %v208_v17, %v183_v43  ;;  %v456_v15 = vpop.permute.xlu1 %455 }
 0x107   :  { %162 = vrot.lane.b32.xlu1 %v160_v34, %s1503_s24  ;;  %142 = vrot.lane.b32.xlu0 %v140_v35, %s1504_s25  ;;  %v260_v49 = vmul.f32 %v258_v20, %v1614_v38  ;;  %v185_v50 = vmul.f32 %v183_v43, %v178_v16  ;;  %v284_v52 = vmul.f32 %v1586_v21, %v1614_v38  ;;  %v1663_v16 = vsub.s32 3, %v1590_v26 }
 0x108   :  { %v200_v53 = vmul.f32 %v198_v37, %v183_v43  ;;  %v220_v57 = vmul.f32 %v218_v18, %v183_v43  ;;  %v309_v62 = vmul.f32 %v307_v59, %v283_v56  ;;  %v270_v63 = vmul.f32 %v268_v54, %v1614_v38 }
 0x109   :  { %v339_v6 = vmul.f32 %v337_v36, %v1645_v61  ;;  %v285_v7 = vmul.f32 %v283_v56, %v1586_v21  ;;  %v359_v9 = vmul.f32 %v357_v41, %v1645_v61  ;;  %v299_v10 = vmul.f32 %v1588_v23, %v283_v56 }
 0x10a   :  { %v383_v13 = vmul.f32 %v377_v12, %v1645_v61  ;;  %v319_v14 = vmul.f32 %v1595_v28, %v283_v56  ;;  %v382_v17 = vrot.slane %v1603_v32, %v1637_v55  ;;  %v349_v18 = vmul.f32 %v347_v8, %v1645_v61  ;;  %v466_v22 = vpop.permute.xlu1 %465 }
 0x10b   :  { %188 = vrot.lane.b32.xlu1 %v184_v39, %s1505_s26  ;;  %152 = vrot.lane.b32.xlu0 %v150_v40, %s1506_s27  ;;  %v1672_v19 = vrot.slane %v1597_v30, %v1663_v16  ;;  %v369_v21 = vmul.f32 %v367_v48, %v1645_v61  ;;  %v481_v34 = vrot.slane %v1603_v32, %v1663_v16 }
 0x10c   :  { %v408_v20 = vmul.f32 %v406_v58, %v382_v17  ;;  %v384_v25 = vmul.f32 %v382_v17, %v377_v12  ;;  %v398_v29 = vmul.f32 %v396_v51, %v382_v17 }
 0x10d   :  { %v438_v23 = vmul.f32 %v436_v4, %v1672_v19  ;;  %v458_v28 = vmul.f32 %v456_v15, %v1672_v19  ;;  %v448_v40 = vmul.f32 %v446_v11, %v1672_v19  ;;  %v468_v43 = vmul.f32 %v466_v22, %v1672_v19 }
 0x10e   :  { %v495_v26 = vpop.permute.xlu1 %494 }
 0x10f   :  { %242 = vrot.lane.b32.xlu1 %v240_v44, %s1504_s25  ;;  %172 = vrot.lane.b32.xlu0 %v170_v45, %s1507_s28  ;;  %v497_v39 = vmul.f32 %v495_v26, %v481_v34 }
 0x112   :  { %v505_v37 = vpop.permute.xlu1 %504 }
 0x113   :  { %252 = vrot.lane.b32.xlu0 %v250_v46, %s1506_s27  ;;  %212 = vrot.lane.b32.xlu1 %v210_v47, %s1508_s29  ;;  %v507_v44 = vmul.f32 %v505_v37, %v481_v34 }
 0x116   :  { %v515_v41 = vpop.permute.xlu1 %514 }
 0x117   :  { %262 = vrot.lane.b32.xlu1 %v260_v49, %s1503_s24  ;;  %190 = vrot.lane.b32.xlu0 %v185_v50, %s1505_s26  ;;  %v517_v42 = vmul.f32 %v515_v41, %v481_v34 }
 0x11a   :  { %v228_v46 = vpop.permute.xlu1 %227 }
 0x11b   :  { %288 = vrot.lane.b32.xlu1 %v284_v52, %s1505_s26  ;;  %202 = vrot.lane.b32.xlu0 %v200_v53, %s1509_s30 }
 0x11f   :  { %326 = vperm.xlu1 %1412, %v1544_v3   ;;  %222 = vrot.lane.b32.xlu0 %v220_v57, %s1510_s3 }
 0x123   :  { %311 = vrot.lane.b32.xlu1 %v309_v62, %s1508_s29  ;;  %272 = vrot.lane.b32.xlu0 %v270_v63, %s1507_s28 }
 0x124   :  { %1413 = vset.pattern.permute.xlu1 %v1511_v5 }
 0x127   :  { %341 = vrot.lane.b32.xlu1 %v339_v6, %s1504_s25  ;;  %290 = vrot.lane.b32.xlu0 %v285_v7, %s1505_s26 }
 0x12b   :  { %361 = vrot.lane.b32.xlu1 %v359_v9, %s1503_s24  ;;  %301 = vrot.lane.b32.xlu0 %v299_v10, %s1509_s30 }
 0x12f   :  { %387 = vrot.lane.b32.xlu1 %v383_v13, %s1505_s26  ;;  %321 = vrot.lane.b32.xlu0 %v319_v14, %s1510_s3 }
 0x133   :  { %425 = vperm.xlu1 %1413, %v1544_v3   ;;  %351 = vrot.lane.b32.xlu0 %v349_v18, %s1506_s27  ;;  %v416_v3 = vpop.permute.xlu0 %415 }
 0x134   :  { %v418_v36 = vmul.f32 %v416_v3, %v382_v17 }
 0x137   :  { %410 = vrot.lane.b32.xlu1 %v408_v20, %s1508_s29  ;;  %371 = vrot.lane.b32.xlu0 %v369_v21, %s1507_s28  ;;  %v476_v30 = vpop.permute.xlu0 %475 }
 0x138   :  { %1414 = vset.pattern.permute.xlu1 %v1489_v60  ;;  %v482_v35 = vmul.f32 %v476_v30, %v1672_v19  ;;  %v483_v32 = vmul.f32 %v481_v34, %v476_v30 }
 0x13b   :  { %440 = vrot.lane.b32.xlu1 %v438_v23, %s1504_s25  ;;  %389 = vrot.lane.b32.xlu0 %v384_v25, %s1505_s26  ;;  %v129_v45 = vpop.permute.xlu0 %128 }
 0x13c   :  { %v135_v49 = vmul.f32 %v1601_v31, %v129_v45  ;;  %v234_v31 = vmul.f32 %v1614_v38, %v228_v46 }
 0x13f   :  { %460 = vrot.lane.b32.xlu1 %v458_v28, %s1503_s24  ;;  %400 = vrot.lane.b32.xlu0 %v398_v29, %s1509_s30 }
 0x143   :  { %486 = vrot.lane.b32.xlu1 %v482_v35, %s1505_s26  ;;  %420 = vrot.lane.b32.xlu0 %v418_v36, %s1510_s3 }
 0x147   :  { %499 = vrot.lane.b32.xlu1 %v497_v39, %s1509_s30  ;;  %450 = vrot.lane.b32.xlu0 %v448_v40, %s1506_s27 }
 0x14b   :  { %519 = vrot.lane.b32.xlu1 %v517_v42, %s1510_s3  ;;  %470 = vrot.lane.b32.xlu0 %v468_v43, %s1507_s28 }
 0x14f   :  { %488 = vrot.lane.b32.xlu0 %v483_v32, %s1505_s26 }
 0x153   :  { %509 = vrot.lane.b32.xlu0 %v507_v44, %s1508_s29 }
 0x179   :  { %v143_v47 = vpop.permute.xlu0 %142  ;;  %v163_v48 = vpop.permute.xlu1 %162 }
 0x17a   :  { %v145_v51 = vadd.f32 %v143_v47, %v135_v49 }
 0x17d   :  { %v153_v50 = vpop.permute.xlu0 %152  ;;  %v189_v54 = vpop.permute.xlu1 %188 }
 0x17e   :  { %v155_v52 = vadd.f32 %v153_v50, %v145_v51 }
 0x180   :  { %v165_v56 = vadd.f32 %v163_v48, %v155_v52 }
 0x181   :  { %v173_v53 = vpop.permute.xlu0 %172  ;;  %v243_v58 = vpop.permute.xlu1 %242 }
 0x182   :  { %v175_v59 = vadd.f32 %v173_v53, %v165_v56 }
 0x185   :  { %v253_v57 = vpop.permute.xlu0 %252  ;;  %v213_v6 = vpop.permute.xlu1 %212 }
 0x189   :  { %v191_v62 = vpop.permute.xlu0 %190  ;;  %v263_v11 = vpop.permute.xlu1 %262 }
 0x18a   :  { %v193_v63 = vsel %vm192_vm1, %v189_v54, %v191_v62 }
 0x18b   :  { %v195_v4 = vadd.f32 %v193_v63, %v175_v59 }
 0x18d   :  { %v203_v5 = vpop.permute.xlu0 %202  ;;  %v289_v18 = vpop.permute.xlu1 %288 }
 0x18e   :  { %v205_v7 = vadd.f32 %v203_v5, %v195_v4 }
 0x190   :  { %v215_v8 = vadd.f32 %v213_v6, %v205_v7 }
 0x191   :  { %v223_v9 = vpop.permute.xlu0 %222 }
 0x192   :  { %v225_v10 = vadd.f32 %v223_v9, %v215_v8 }
 0x194   :  { %v235_v12 = vadd.f32 %v234_v31, %v225_v10 }
 0x195   :  { %v273_v13 = vpop.permute.xlu0 %272 }
 0x196   :  { %v245_v14 = vadd.f32 %v243_v58, %v235_v12 }
 0x198   :  { %v255_v15 = vadd.f32 %v253_v57, %v245_v14 }
 0x199   :  { %v291_v17 = vpop.permute.xlu0 %290 }
 0x19a   :  { %v265_v20 = vadd.f32 %v263_v11, %v255_v15  ;;  %v292_v22 = vsel %vm192_vm1, %v289_v18, %v291_v17 }
 0x19c   :  { %v275_v21 = vadd.f32 %v273_v13, %v265_v20 }
 0x19d   :  { %v302_v23 = vpop.permute.xlu0 %301 }
 0x19e   :  { %v294_v25 = vadd.f32 %v292_v22, %v275_v21  ;;  %v327_v3 = vpop.permute.xlu1 %326 }
 0x19f   :  { %v333_v38 = vmul.f32 %v1645_v61, %v327_v3 }
 0x1a0   :  { %v304_v26 = vadd.f32 %v302_v23, %v294_v25 }
 0x1a1   :  { %v322_v28 = vpop.permute.xlu0 %321 }
 0x1a2   :  { %v312_v29 = vpop.permute.xlu1 %311 }
 0x1a3   :  { %v314_v30 = vadd.f32 %v312_v29, %v304_v26 }
 0x1a5   :  { %v324_v34 = vadd.f32 %v322_v28, %v314_v30  ;;  %v352_v35 = vpop.permute.xlu0 %351  ;;  %v523_v28 = vld [vmem:[#allocation2 + $0x268] sm:$0xf] }
 0x1a6   :  { %v342_v36 = vpop.permute.xlu1 %341 }
 0x1a7   :  { %v334_v37 = vadd.f32 %v333_v38, %v324_v34  ;;  %v524_v38 = vld [vmem:[#allocation2 + $0x298] sm:$0xf] }
 0x1a9   :  { %v344_v39 = vadd.f32 %v342_v36, %v334_v37  ;;  %v372_v40 = vpop.permute.xlu0 %371  ;;  %v557_v36 = vld [vmem:[#allocation2 + $0xe8] sm:$0xff]  ;;  %v1512_v37 = vmov 0.0|0.0  }
 0x1aa   :  { %v362_v41 = vpop.permute.xlu1 %361  ;;  %1277 = vmatprep.subr.bf16.mxu1 %v1512_v37  ;;  %1310 = vmatprep.subr.bf16.mxu0 %v1512_v37 }
 0x1ab   :  { %v354_v42 = vadd.f32 %v352_v35, %v344_v39  ;;  %v556_v35 = vld [vmem:[#allocation2 + $0xb8] sm:$0xff] }
 0x1ac   :  { %v1278_v39 = vpack.c.bf16 %v557_v36, %v556_v35  ;;  %v914_v35 = vld [vmem:[#allocation2 + $0x18] sm:$0xff]  ;;  %v917_v36 = vld [vmem:[#allocation2 + $0x48] sm:$0xff] }
 0x1ad   :  { %v364_v43 = vadd.f32 %v362_v41, %v354_v42  ;;  %v390_v32 = vpop.permute.xlu0 %389  ;;  %v715_v41 = vld [vmem:[#allocation2 + $0x208] sm:$0xf]  ;;  %v558_v42 = vld [vmem:[#allocation2 + $0x118] sm:$0xff] }
 0x1ae   :  { %v388_v44 = vpop.permute.xlu1 %387  ;;  %1279 = vmatpush3.bf16.msra.mxu1 %v1278_v39  ;;  %v913_v39 = vld [vmem:[#allocation2 + $0x10] sm:$0xff] }
 0x1af   :  { %v374_v45 = vadd.f32 %v372_v40, %v364_v43  ;;  %v391_v46 = vsel %vm192_vm1, %v388_v44, %v390_v32  ;;  %1203 = vmatprep.subr.mxu1 %v1468_v1 }
 0x1b1   :  { %v393_v47 = vadd.f32 %v391_v46, %v374_v45  ;;  %v401_v48 = vpop.permute.xlu0 %400 }
 0x1b2   :  { %v426_v49 = vpop.permute.xlu1 %425  ;;  %1204 = vmatpush3.msra.mxu1 %v558_v42  ;;  %v918_v42 = vld [vmem:[#allocation2 + $0x50] sm:$0xff] }
 0x1b3   :  { %v403_v50 = vadd.f32 %v401_v48, %v393_v47  ;;  %v432_v53 = vmul.f32 %v1672_v19, %v426_v49  ;;  %1280 = vmatprep.subr.bf16.mxu1 %v1512_v37  ;;  %v636_v47 = vld [vmem:[#allocation2 + $0x148] sm:$0xff]  ;;  %v637_v48 = vld [vmem:[#allocation2 + $0x178] sm:$0xff] }
 0x1b4   :  { %v1281_v49 = vpack.c.bf16 %v637_v48, %v636_v47 }
 0x1b5   :  { %v421_v51 = vpop.permute.xlu0 %420 }
 0x1b6   :  { %v411_v61 = vpop.permute.xlu1 %410 }
 0x1b7   :  { %v413_v52 = vadd.f32 %v411_v61, %v403_v50  ;;  %v638_v50 = vld [vmem:[#allocation2 + $0x1a8] sm:$0xff] }
 0x1b9   :  { %v423_v54 = vadd.f32 %v421_v51, %v413_v52  ;;  %v451_v56 = vpop.permute.xlu0 %450  ;;  %v559_v51 = vld [vmem:[#allocation2 + $0x388] ss:$0 sm:$0xff] }
 0x1ba   :  { %v441_v57 = vpop.permute.xlu1 %440 }
 0x1bb   :  { %v433_v58 = vadd.f32 %v432_v53, %v423_v54 }
 0x1bd   :  { %v443_v59 = vadd.f32 %v441_v57, %v433_v58  ;;  %v471_v62 = vpop.permute.xlu0 %470  ;;  %v756_v57 = vld [vmem:[#allocation2 + $0x28] sm:$0xff]  ;;  %v757_v58 = vld [vmem:[#allocation2 + $0x58] sm:$0xff] }
 0x1be   :  { %v461_v63 = vpop.permute.xlu1 %460 }
 0x1bf   :  { %v453_v4 = vadd.f32 %v451_v56, %v443_v59  ;;  %v1284_v59 = vpack.c.bf16 %v757_v58, %v756_v57  ;;  %v923_v57 = vld [vmem:[#allocation2 + $0xa8] sm:$0xff]  ;;  %v919_v58 = vld [vmem:[#allocation2 + $0x70] sm:$0xff] }
 0x1c1   :  { %v463_v5 = vadd.f32 %v461_v63, %v453_v4  ;;  %v489_v6 = vpop.permute.xlu0 %488  ;;  %v758_v63 = vld [vmem:[#allocation2 + $0x88] sm:$0xff] }
 0x1c2   :  { %v487_v7 = vpop.permute.xlu1 %486 }
 0x1c3   :  { %v473_v8 = vadd.f32 %v471_v62, %v463_v5  ;;  %v490_v9 = vsel %vm192_vm1, %v487_v7, %v489_v6  ;;  %v759_v62 = vld [vmem:[#allocation2 + $0x2c8] sm:$0xf]  ;;  %v639_v5 = vld [vmem:[#allocation2 + $0x3b8] ss:$0 sm:$0xff] }
 0x1c5   :  { %v492_v31 = vadd.f32 %v490_v9, %v473_v8  ;;  %v510_v12 = vpop.permute.xlu0 %509 }
 0x1c6   :  { %v500_v10 = vpop.permute.xlu1 %499 }
 0x1c7   :  { %v502_v11 = vadd.f32 %v500_v10, %v492_v31 }
 0x1c9   :  { %v512_v13 = vadd.f32 %v510_v12, %v502_v11 }
 0x1ca   :  { %v520_v19 = vpop.permute.xlu1 %519 }
 0x1cb   :  { %v522_v14 = vadd.f32 %v520_v19, %v512_v13 }
 0x1cd   :  { %v526_v15 = vsel %vm525_vm2, %v522_v14, 0.0  ;;  %v531_v17 = vmul.f32 %v522_v14, %v522_v14 }
 0x1ce   :  { %527 = vadd.xlane.f32.xlu0 %v526_v15 }
 0x1cf   :  { %v532_v18 = vsel %vm525_vm2, %v531_v17, 0.0 }
 0x1d0   :  { %533 = vadd.xlane.f32.xlu1 %v532_v18 }
 0x25b   :  { %v528_v20 = vpop.xlane.xlu0 %527 }
 0x25c   :  { %v530_v21 = vmul.f32 0.041666668, %v528_v20 }
 0x25d   :  { %v534_v22 = vpop.xlane.xlu1 %533 }
 0x25e   :  { %v536_v23 = vmul.f32 %v530_v21, %v530_v21  ;;  %v535_v25 = vmul.f32 0.041666668, %v534_v22 }
 0x260   :  { %v537_v3 = vsub.f32 %v535_v25, %v536_v23 }
 0x262   :  { %v538_v26 = vadd.f32 4.0, %v537_v3 }
 0x264   :  { %1423 = vrsqrt.f32 %v538_v26 }
 0x26e   :  { %v1424_v29 = vpop.eup %1423 }
 0x26f   :  { %v540_v30 = vmul.f32 %v1424_v29, %v523_v28 }
 0x271   :  { %545 = vperm.xlu0 %1407, %v540_v30   ;;  %v541_v34 = vmul.f32 %v540_v30, %v530_v21 }
 0x273   :  { %v542_v40 = vsub.f32 %v524_v38, %v541_v34 }
 0x275   :  { %551 = vperm.xlu1 %1414, %v542_v40   ;;  %v1286_v40 = vpack.c.bf16 %v917_v36, %v914_v35 }
 0x279   :  { %718 = vperm.xlu1 %1414, %v715_v41  }
 0x27d   :  { %1415 = vset.pattern.permute.xlu1 %v1469_v2 }
 0x27e   :  { %727 = vperm.xlu1 %1415, %v715_v41  }
 0x282   :  { %1416 = vset.pattern.permute.xlu1 %v1471_v24 }
 0x283   :  { %737 = vperm.xlu1 %1416, %v715_v41  }
 0x287   :  { %1417 = vset.pattern.permute.xlu1 %v1467_v0 }
 0x288   :  { %747 = vperm.xlu1 %1417, %v715_v41   ;;  %v916_v41 = vld [vmem:[#allocation2 + $0x40] sm:$0xff] }
 0x28c   :  { %1418 = vset.pattern.permute.xlu1 %v1489_v60 }
 0x28d   :  { %762 = vperm.xlu1 %1418, %v759_v62   ;;  %v922_v62 = vld [vmem:[#allocation2 + $0xa0] sm:$0xff] }
 0x2f0   :  { %v546_v43 = vpop.permute.xlu0 %545 }
 0x2f1   :  { %v548_v32 = vmul.f32 %v546_v43, %v522_v14  ;;  %v1288_v43 = vpack.c.bf16 %v916_v41, %v913_v39  ;;  %v944_v39 = vld [vmem:[#allocation2 + $0x1f8] sm:$0xff]  ;;  %v943_v41 = vld [vmem:[#allocation2 + $0x1f0] sm:$0xff] }
 0x2f4   :  { %v552_v44 = vpop.permute.xlu1 %551 }
 0x2f5   :  { %v554_v45 = vadd.f32 %v552_v44, %v548_v32 }
 0x2f7   :  { %v555_v46 = vmax.f32 %v554_v45, 0.0 }
 0x2f8   :  { %v719_v4 = vpop.permute.xlu1 %718 }
 0x2f9   :  { %1206 = vmatmul.mubr.msk.f32.vlgmr.msra.gmra.mrb[0].mxu1 %vm560_vm4, %v555_v46 }
 0x2fa   :  { %1214 = vmatprep.mubr.msk.f32.mxu1 %vm1513_vm3, %v1468_v1  ;;  %1282 = vmatpush3.bf16.msra.mxu1 %v1281_v49 }
 0x2fb   :  { %1212 = vmatprep.subr.mxu1 %v1468_v1 }
 0x2fd   :  { %v728_v6 = vpop.permute.xlu1 %727 }
 0x2fe   :  { %1213 = vmatpush3.msra.mxu1 %v638_v50 }
 0x2ff   :  { %1283 = vmatprep.subr.bf16.mxu1 %v1512_v37 }
 0x302   :  { %v738_v10 = vpop.permute.xlu1 %737 }
 0x307   :  { %v748_v18 = vpop.permute.xlu1 %747 }
 0x30c   :  { %v763_v3 = vpop.permute.xlu1 %762 }
 0x3cc   :  { %v630_v61 = vpop.f32.mrb[0].mxu1 }
 0x3cd   :  { %v631_v52 = vadd.f32 %v630_v61, %v559_v51  ;;  %v1207_v53 = vpop.f32.mrb[1].mxu1  ;;  %v838_v51 = vld [vmem:[#allocation2 + $0x2f8] sm:$0xf] }
 0x3ce   :  { %v839_v53 = vld [vmem:[#allocation2 + $0x328] sm:$0xf] }
 0x3cf   :  { %v634_v54 = vmax.f32 %v631_v52, 0.0 }
 0x3d1   :  { %v635_v56 = vmin.f32 %v634_v54, 6.0 }
 0x3d3   :  { %1215 = vmatmul.mubr.msk.f32.vlgmr.msra.gmra.mrb[2].mxu1 %vm560_vm4, %v635_v56  ;;  %v920_v56 = vld [vmem:[#allocation2 + $0x78] sm:$0xff] }
 0x3d4   :  { %1223 = vmatprep.mubr.msk.f32.mxu1 %vm1513_vm3, %v1468_v1  ;;  %1285 = vmatpush3.bf16.msra.mxu1 %v1284_v59  ;;  %v1290_v59 = vpack.c.bf16 %v923_v57, %v920_v56 }
 0x3d5   :  { %1221 = vmatprep.subr.mxu1 %v1468_v1 }
 0x3d8   :  { %1222 = vmatpush3.msra.mxu1 %v758_v63  ;;  %v921_v63 = vld [vmem:[#allocation2 + $0x80] sm:$0xff] }
 0x3d9   :  { %1287 = vmatprep.subr.bf16.mxu1 %v1286_v40  ;;  %v947_v40 = vld [vmem:[#allocation2 + $0x228] sm:$0xff] }
 0x4a6   :  { %v709_v7 = vpop.f32.mrb[2].mxu1 }
 0x4a7   :  { %v710_v8 = vadd.f32 %v709_v7, %v639_v5  ;;  %v1216_v9 = vpop.f32.mrb[3].mxu1 }
 0x4a8   :  { %v926_v9 = vld [vmem:[#allocation2 + $0xd8] sm:$0xff] }
 0x4a9   :  { %v713_v31 = vmax.f32 %v710_v8, 0.0  ;;  %v872_v8 = vld [vmem:[#allocation2 + $0x238] sm:$0x7] }
 0x4ab   :  { %v714_v11 = vmin.f32 %v713_v31, 1.0  ;;  %v929_v31 = vld [vmem:[#allocation2 + $0x108] sm:$0xff] }
 0x4ad   :  { %v724_v12 = vrot.slane %v714_v11, %v1593_v27  ;;  %v733_v13 = vrot.slane %v714_v11, %v1606_v33  ;;  %v743_v19 = vrot.slane %v714_v11, %v1637_v55  ;;  %v753_v17 = vrot.slane %v714_v11, %v1663_v16 }
 0x4ae   :  { %v1294_v11 = vpack.c.bf16 %v929_v31, %v926_v9 }
 0x4af   :  { %v725_v14 = vmul.f32 %v724_v12, %v719_v4  ;;  %v734_v15 = vmul.f32 %v733_v13, %v728_v6  ;;  %v744_v21 = vmul.f32 %v743_v19, %v738_v10  ;;  %v754_v23 = vmul.f32 %v753_v17, %v748_v18  ;;  %v924_v4 = vld [vmem:[#allocation2 + $0xb0] sm:$0xff]  ;;  %v928_v12 = vld [vmem:[#allocation2 + $0x100] sm:$0xff]  ;;  %v935_v17 = vld [vmem:[#allocation2 + $0x168] sm:$0xff] }
 0x4b0   :  { %v1292_v6 = vpack.c.bf16 %v922_v62, %v919_v58  ;;  %v1314_v7 = vpack.c.bf16 %v924_v4, %v921_v63  ;;  %v925_v10 = vld [vmem:[#allocation2 + $0xd0] sm:$0xff]  ;;  %v927_v13 = vld [vmem:[#allocation2 + $0xe0] sm:$0xff] }
 0x4b1   :  { %v735_v20 = vadd.f32 %v734_v15, %v725_v14  ;;  %v930_v19 = vld [vmem:[#allocation2 + $0x110] sm:$0xff]  ;;  %v1296_v14 = vpack.c.bf16 %v928_v12, %v925_v10 }
 0x4b2   :  { %v1317_v15 = vpack.c.bf16 %v930_v19, %v927_v13  ;;  %v931_v18 = vld [vmem:[#allocation2 + $0x130] sm:$0xff] }
 0x4b3   :  { %v745_v22 = vadd.f32 %v744_v21, %v735_v20  ;;  %v934_v21 = vld [vmem:[#allocation2 + $0x160] sm:$0xff] }
 0x4b5   :  { %v755_v25 = vadd.f32 %v754_v23, %v745_v22  ;;  %v933_v22 = vld [vmem:[#allocation2 + $0x140] sm:$0xff]  ;;  %v936_v23 = vld [vmem:[#allocation2 + $0x170] sm:$0xff] }
 0x4b7   :  { %1224 = vmatmul.mubr.msk.f32.vlgmr.msra.gmra.mrb[4].mxu1 %vm560_vm4, %v755_v25  ;;  %v1300_v25 = vpack.c.bf16 %v934_v21, %v931_v18 }
 0x4b8   :  { %1022 = vmatprep.mubr.f32.mxu1 %v1468_v1  ;;  %v915_v1 = vld [vmem:[#allocation2 + $0x20] sm:$0xff]  ;;  %1289 = vmatpush1.bf16.msra.mxu1 %v1288_v43 }
 0x4b9   :  { %v1311_v32 = vpack.c.bf16 %v918_v42, %v915_v1  ;;  %1291 = vmatprep.subr.bf16.mxu1 %v1290_v59  ;;  %v1306_v1 = vpack.c.bf16 %v947_v40, %v944_v39  ;;  %v946_v42 = vld [vmem:[#allocation2 + $0x220] sm:$0xff] }
 0x4ba   :  { %v945_v43 = vld [vmem:[#allocation2 + $0x200] sm:$0xff] }
 0x4bb   :  { %1312 = vmatpush3.bf16.msra.mxu0 %v1311_v32  ;;  %v1308_v32 = vpack.c.bf16 %v946_v42, %v943_v41 }
 0x4bc   :  { %1313 = vmatprep.subr.bf16.mxu0 %v1512_v37  ;;  %1293 = vmatpush1.bf16.msra.mxu1 %v1292_v6 }
 0x4bd   :  { %1295 = vmatprep.subr.bf16.mxu1 %v1294_v11 }
 0x4bf   :  { %1315 = vmatpush3.bf16.msra.mxu0 %v1314_v7 }
 0x4c0   :  { %1316 = vmatprep.subr.bf16.mxu0 %v1512_v37  ;;  %1297 = vmatpush1.bf16.msra.mxu1 %v1296_v14 }
 0x4c3   :  { %1318 = vmatpush3.bf16.msra.mxu0 %v1317_v15 }
 0x4c4   :  { %1319 = vmatprep.subr.bf16.mxu0 %v1512_v37 }
 0x58a   :  { %v834_v26 = vpop.f32.mrb[4].mxu1 }
 0x58b   :  { %v1732_v28 = vadd.f32 %v834_v26, %v763_v3  ;;  %v1225_v29 = vpop.f32.mrb[5].mxu1  ;;  %v1320_v3 = vpack.c.bf16 %v936_v23, %v933_v22  ;;  %v941_v26 = vld [vmem:[#allocation2 + $0x1c8] sm:$0xff] }
 0x58c   :  { %v937_v29 = vld [vmem:[#allocation2 + $0x190] sm:$0xff] }
 0x58d   :  { %v841_v30 = vsel %vm840_vm5, %v1732_v28, 0.0  ;;  %v846_v38 = vmul.f32 %v1732_v28, %v1732_v28  ;;  %1321 = vmatpush3.bf16.msra.mxu0 %v1320_v3 }
 0x58e   :  { %842 = vadd.xlane.f32.xlu1 %v841_v30  ;;  %v940_v30 = vld [vmem:[#allocation2 + $0x1c0] sm:$0xff]  ;;  %1322 = vmatprep.subr.bf16.mxu0 %v1512_v37 }
 0x58f   :  { %v847_v34 = vsel %vm840_vm5, %v846_v38, 0.0  ;;  %v939_v38 = vld [vmem:[#allocation2 + $0x1a0] sm:$0xff]  ;;  %v1304_v35 = vpack.c.bf16 %v940_v30, %v937_v29 }
 0x590   :  { %848 = vadd.xlane.f32.xlu0 %v847_v34  ;;  %v942_v34 = vld [vmem:[#allocation2 + $0x1d0] sm:$0xff] }
 0x591   :  { %v1323_v36 = vpack.c.bf16 %v942_v34, %v939_v38 }
 0x593   :  { %1324 = vmatpush3.bf16.msra.mxu0 %v1323_v36 }
 0x594   :  { %1325 = vmatprep.subr.bf16.mxu0 %v1512_v37 }
 0x61b   :  { %v843_v44 = vpop.xlane.xlu1 %842 }
 0x61c   :  { %v845_v45 = vmul.f32 0.010416667, %v843_v44 }
 0x61d   :  { %v849_v46 = vpop.xlane.xlu0 %848 }
 0x61e   :  { %v851_v47 = vmul.f32 %v845_v45, %v845_v45  ;;  %v850_v48 = vmul.f32 0.010416667, %v849_v46 }
 0x620   :  { %v852_v49 = vsub.f32 %v850_v48, %v851_v47 }
 0x622   :  { %v853_v50 = vadd.f32 4.0, %v852_v49 }
 0x624   :  { %1425 = vrsqrt.f32 %v853_v50 }
 0x62e   :  { %v1426_v61 = vpop.eup %1425 }
 0x62f   :  { %v855_v52 = vmul.f32 %v1426_v61, %v838_v51  ;;  %v1439_v61 = vld [vmem:[%s1768_s0] sm:$0xf] }
 0x631   :  { %860 = vperm.xlu0 %1407, %v855_v52   ;;  %v856_v54 = vmul.f32 %v855_v52, %v845_v45  ;;  %v949_v45 = vld [vmem:[#allocation2 + $0x358] sm:$0x7] }
 0x633   :  { %v857_v5 = vsub.f32 %v839_v53, %v856_v54 }
 0x635   :  { %866 = vperm.xlu1 %1418, %v857_v5   ;;  %1419 = vset.pattern.permute.xlu0 %v1469_v2  ;;  %v932_v2 = vld [vmem:[#allocation2 + $0x138] sm:$0xff] }
 0x636   :  { %884 = vperm.xlu0 %1419, %v872_v8   ;;  %v1298_v20 = vpack.c.bf16 %v935_v17, %v932_v2 }
 0x638   :  { %1299 = vmatprep.subr.bf16.mxu1 %v1298_v20 }
 0x639   :  { %875 = vperm.xlu1 %1418, %v872_v8   ;;  %1301 = vmatpush1.bf16.msra.mxu1 %v1300_v25 }
 0x63a   :  { %1422 = vset.pattern.permute.xlu0 %v1489_v60  ;;  %v938_v60 = vld [vmem:[#allocation2 + $0x198] sm:$0xff] }
 0x63b   :  { %952 = vperm.xlu0 %1422, %v949_v45  }
 0x63d   :  { %1420 = vset.pattern.permute.xlu1 %v1471_v24  ;;  %v1302_v24 = vpack.c.bf16 %v941_v26, %v938_v60 }
 0x63e   :  { %894 = vperm.xlu1 %1420, %v872_v8  }
 0x63f   :  { %1303 = vmatprep.subr.bf16.mxu1 %v1302_v24 }
 0x640   :  { %1305 = vmatpush1.bf16.msra.mxu1 %v1304_v35 }
 0x641   :  { %1307 = vmatprep.subr.bf16.mxu1 %v1306_v1 }
 0x642   :  { %1421 = vset.pattern.permute.xlu1 %v1467_v0  ;;  %v948_v0 = vld [vmem:[#allocation2 + $0x230] sm:$0xff] }
 0x643   :  { %904 = vperm.xlu1 %1421, %v872_v8   ;;  %v1326_v44 = vpack.c.bf16 %v948_v0, %v945_v43 }
 0x644   :  { %1309 = vmatpush1.bf16.msra.mxu1 %v1308_v32 }
 0x645   :  { %1327 = vmatpush3.bf16.msra.mxu0 %v1326_v44 }
 0x6b0   :  { %v861_v46 = vpop.permute.xlu0 %860 }
 0x6b1   :  { %v863_v47 = vmul.f32 %v861_v46, %v1732_v28 }
 0x6b4   :  { %v867_v48 = vpop.permute.xlu1 %866 }
 0x6b5   :  { %v869_v49 = vadd.f32 %v867_v48, %v863_v47  ;;  %v885_v37 = vpop.permute.xlu0 %884 }
 0x6b7   :  { %v870_v50 = vmax.f32 %v869_v49, 0.0 }
 0x6b8   :  { %v876_v51 = vpop.permute.xlu1 %875 }
 0x6b9   :  { %v871_v52 = vadd.f32 %v1439_v61, %v870_v50 }
 0x6bb   :  { %v881_v53 = vrot.slane %v871_v52, %v1593_v27  ;;  %v890_v54 = vrot.slane %v871_v52, %v1606_v33  ;;  %v900_v56 = vrot.slane %v871_v52, %v1637_v55  ;;  %v910_v63 = vrot.slane %v871_v52, %v1663_v16  ;;  %v953_v27 = vpop.permute.xlu0 %952 }
 0x6bd   :  { %v882_v57 = vmul.f32 %v881_v53, %v876_v51  ;;  %v891_v58 = vmul.f32 %v890_v54, %v885_v37  ;;  %v895_v59 = vpop.permute.xlu1 %894 }
 0x6be   :  { %v901_v62 = vmul.f32 %v900_v56, %v895_v59 }
 0x6bf   :  { %v892_v28 = vadd.f32 %v891_v58, %v882_v57 }
 0x6c1   :  { %v902_v5 = vadd.f32 %v901_v62, %v892_v28 }
 0x6c2   :  { %v905_v4 = vpop.permute.xlu1 %904 }
 0x6c3   :  { %v911_v6 = vmul.f32 %v910_v63, %v905_v4 }
 0x6c5   :  { %v912_v7 = vadd.f32 %v911_v6, %v902_v5 }
 0x6c7   :  { %1172 = vmatmul.mubr.msk.f32.vlgmr.msra.gmra.mrb[6].mxu1 %vm50_vm0, %v912_v7  ;;  %1251 = vmatmul.mubr.msk.f32.vlgmr.msra.gmra.mrb[2].mxu0 %vm50_vm0, %v912_v7 }
 0x79a   :  { %v1024_v8 = vpop.f32.mrb[6].mxu1  ;;  %v1095_v33 = vpop.f32.mrb[2].mxu0 }
 0x79b   :  { %v1025_v55 = vadd.f32 %v1024_v8, %v953_v27  ;;  %v1096_v9 = vadd.f32 %v1095_v33, %v953_v27  ;;  %v1026_v31 = vpop.f32.mrb[7].mxu1  ;;  %v1252_v10 = vpop.f32.mrb[3].mxu0 }
 0x79c   :  { %v1027_v11 = vadd.f32 %v1026_v31, %v953_v27 }
 0x79d   :  { %v1100_v12 = vsel %vm1099_vm6, %v1025_v55, -inf  ;;  %v1114_v16 = vsel %vm1099_vm6, %v1096_v9, -inf }
 0x79e   :  { %v1101_v13 = vrot.slane %v1100_v12, 4  ;;  %v1115_v19 = vrot.slane %v1114_v16, 4  ;;  %v1107_v14 = vsel %vm1099_vm6, %v1027_v11, -inf }
 0x79f   :  { %v1108_v15 = vrot.slane %v1107_v14, 4 }
 0x7a0   :  { %v1102_v2 = vmax.f32 %v1100_v12, %v1101_v13  ;;  %v1116_v17 = vmax.f32 %v1114_v16, %v1115_v19 }
 0x7a1   :  { %v1109_v18 = vmax.f32 %v1107_v14, %v1108_v15 }
 0x7a2   :  { %v1103_v20 = vrot.slane %v1102_v2, 2  ;;  %v1117_v21 = vrot.slane %v1116_v17, 2 }
 0x7a3   :  { %v1110_v22 = vrot.slane %v1109_v18, 2 }
 0x7a4   :  { %v1104_v23 = vmax.f32 %v1102_v2, %v1103_v20  ;;  %v1118_v25 = vmax.f32 %v1116_v17, %v1117_v21 }
 0x7a5   :  { %v1111_v3 = vmax.f32 %v1109_v18, %v1110_v22 }
 0x7a6   :  { %v1105_v60 = vrot.slane %v1104_v23, 1  ;;  %v1119_v26 = vrot.slane %v1118_v25, 1 }
 0x7a7   :  { %v1112_v29 = vrot.slane %v1111_v3, 1 }
 0x7a8   :  { %v1106_v24 = vmax.f32 %v1104_v23, %v1105_v60  ;;  %v1120_v30 = vmax.f32 %v1118_v25, %v1119_v26 }
 0x7a9   :  { %v1113_v38 = vmax.f32 %v1111_v3, %v1112_v29 }
 0x7aa   :  { %v1121_v34 = vsub.f32 %v1025_v55, %v1106_v24  ;;  %v1123_v35 = vsub.f32 %v1096_v9, %v1120_v30 }
 0x7ab   :  { %v1122_v36 = vsub.f32 %v1027_v11, %v1113_v38 }
 0x7ac   :  { %v1124_v39 = vmul.f32 1.442695, %v1121_v34  ;;  %v1128_v40 = vmul.f32 1.442695, %v1123_v35 }
 0x7ad   :  { %v1126_v41 = vmul.f32 1.442695, %v1122_v36 }
 0x7ae   :  { %1427 = vpow2.f32 %v1124_v39 }
 0x7af   :  { %1429 = vpow2.f32 %v1128_v40 }
 0x7b0   :  { %1431 = vpow2.f32 %v1126_v41 }
 0x7b8   :  { %v1428_v1 = vpop.eup %1427 }
 0x7b9   :  { %v1430_v42 = vpop.eup %1429  ;;  %v1130_v43 = vsel %vm1099_vm6, %v1428_v1, 0.0 }
 0x7ba   :  { %v1432_v0 = vpop.eup %1431  ;;  %v1131_v32 = vrot.slane %v1130_v43, 4  ;;  %v1144_v44 = vsel %vm1099_vm6, %v1430_v42, 0.0 }
 0x7bb   :  { %v1145_v45 = vrot.slane %v1144_v44, 4  ;;  %v1137_v46 = vsel %vm1099_vm6, %v1432_v0, 0.0 }
 0x7bc   :  { %v1132_v47 = vadd.f32 %v1131_v32, %v1130_v43  ;;  %v1138_v48 = vrot.slane %v1137_v46, 4 }
 0x7bd   :  { %v1146_v49 = vadd.f32 %v1145_v45, %v1144_v44 }
 0x7be   :  { %v1133_v50 = vrot.slane %v1132_v47, 2  ;;  %v1139_v51 = vadd.f32 %v1138_v48, %v1137_v46 }
 0x7bf   :  { %v1147_v61 = vrot.slane %v1146_v49, 2 }
 0x7c0   :  { %v1134_v52 = vadd.f32 %v1133_v50, %v1132_v47  ;;  %v1140_v37 = vrot.slane %v1139_v51, 2 }
 0x7c1   :  { %v1148_v53 = vadd.f32 %v1147_v61, %v1146_v49 }
 0x7c2   :  { %v1135_v54 = vrot.slane %v1134_v52, 1  ;;  %v1141_v56 = vadd.f32 %v1140_v37, %v1139_v51 }
 0x7c3   :  { %v1149_v57 = vrot.slane %v1148_v53, 1 }
 0x7c4   :  { %v1136_v58 = vadd.f32 %v1135_v54, %v1134_v52  ;;  %v1142_v59 = vrot.slane %v1141_v56, 1 }
 0x7c5   :  { %v1150_v28 = vadd.f32 %v1149_v57, %v1148_v53 }
 0x7c6   :  { %1433 = vrcp.f32 %v1136_v58  ;;  %v1143_v62 = vadd.f32 %v1142_v59, %v1141_v56 }
 0x7c7   :  { %1435 = vrcp.f32 %v1150_v28 }
 0x7c8   :  { %1437 = vrcp.f32 %v1143_v62 }
 0x7d0   :  { %v1434_v63 = vpop.eup %1433 }
 0x7d1   :  { %v1436_v4 = vpop.eup %1435  ;;  %v1152_v5 = vmul.f32 %v1434_v63, %v1428_v1 }
 0x7d2   :  { %v1438_v6 = vpop.eup %1437  ;;  %v1156_v7 = vmul.f32 %v1436_v4, %v1430_v42 }
 0x7d3   :  { %v1154_v27 = vmul.f32 %v1438_v6, %v1432_v0 }
 0x7d4   :  { %1162 = vst [vmem:[%s1770_s2 + $0x8] sm:$0x7] %v1156_v7 }
 0x7d5   :  { %v1159_v8 = vcombine.low %v1152_v5, %v1154_v27 }
 0x7d7   :  { %1161 = vst [vmem:[%s1770_s2] sm:$0x77] %v1159_v8 }
 0x7d8   :  { %1167 = vsyncpa [#allocation3], 1 }

</bundles_post_ra>
